<compile_context>
chip_gen: v7x
topology: tpu7x:2x2x1
jax: 0.10.0
libtpu: 0.0.40
codegen_flags: <defaults>
</compile_context>

<pallas_src>
import functools

import jax
import jax.numpy as jnp
import numpy as np
from jax.experimental import pallas as pl
from jax.experimental.pallas import tpu as pltpu

INPUT_DIM = 6
HIDDEN_DIM = 64
NUM_LAYERS = 2            # hard-wired as two explicit (skewed) LSTM cells below
OUTPUT_DIM = 512


def _lstm_encoder_kernel(T, Bp,
                         x_ref,        # (T*Bp, D)   time-major, row t*Bp + b
                         wih0w_ref,    # (D, 8H)     widened layer-0 input weight (layer-1 cols = 0)
                         bw_ref,       # (1, 8H)     [b_ih0+b_hh0 | b_ih1+b_hh1], interleaved
                         wfused_ref,   # (2H, 8H)    [[Whh0, Wih1], [0, Whh1]], interleaved
                         wfcw_ref,     # (2H, OUT)   [0 ; Wfc]
                         bfc_ref,      # (1, OUT)
                         out_ref):     # (Bp, OUT)
    H = HIDDEN_DIM
    H2 = 2 * H

    # ---- prologue: layer-0 input projection for ALL timesteps + both biases, one matmul ----
    # gxb[t*Bp:(t+1)*Bp] = [ x_t @ Wih0 + b0  (layer-0 lanes) | b1 (layer-1 lanes) ]
    # NOTE: at Bp=8 this is ~32 vregs of live SSA; for much larger batches stage it in a
    # VMEM scratch (scratch_shapes=[pltpu.VMEM((T*Bp, 8H), f32)]) to bound vreg pressure.
    gxb = (jnp.dot(x_ref[...], wih0w_ref[...], preferred_element_type=jnp.float32)
           + bw_ref[...])                                        # (T*Bp, 8H)

    w_fused = wfused_ref[...]                                    # (2H, 8H)

    # lane mask selecting the layer-0 half of the carried (Bp, 2H) state (used once, at s=0)
    lane = jax.lax.broadcasted_iota(jnp.int32, (Bp, H2), 1)
    layer0_mask = (lane < H).astype(jnp.float32)

    # carried state: h01 = [h0 | h1], c01 = [c0 | c1]   (Bp, 2H = 128 lanes)
    h01 = jnp.zeros((Bp, H2), jnp.float32)
    c01 = jnp.zeros((Bp, H2), jnp.float32)

    # Skewed recurrence, fully unrolled (T is small & static).
    # Step s: layer-0 cell for t=s (s<T), layer-1 cell for t=s-1 (s>=1).
    for s in range(T + 1):
        fused = jnp.dot(h01, w_fused, preferred_element_type=jnp.float32)   # (Bp, 8H)
        t0 = min(s, T - 1)          # drain step (s==T): layer-0 half is computed but discarded
        gates = fused + gxb[t0 * Bp:(t0 + 1) * Bp, :]            # tile-aligned slice (Bp=8)

        # interleaved gate layout: [i0 i1 | f0 f1 | o0 o1 | g0 g1]
        sig = jax.nn.sigmoid(gates[:, :3 * H2])
        g_cat = jnp.tanh(gates[:, 3 * H2:])
        i_cat = sig[:, 0 * H2:1 * H2]
        f_cat = sig[:, 1 * H2:2 * H2]
        o_cat = sig[:, 2 * H2:3 * H2]

        c01 = f_cat * c01 + i_cat * g_cat
        h01 = o_cat * jnp.tanh(c01)

        if s == 0:
            # layer 1 has not produced its first output yet: keep its half of the state zero
            h01 = h01 * layer0_mask
            c01 = c01 * layer0_mask

    # fc(out[:, -1, :]) -- layer-0 rows of wfcw are zero, so only h1(T-1) contributes.
    # OUT = 512 -> lane-dense, unmasked store.
    out_ref[...] = (jnp.dot(h01, wfcw_ref[...], preferred_element_type=jnp.float32)
                    + bfc_ref[...]).astype(out_ref.dtype)


def lstm_encoder(x, kparams):
    """x: (B, T, D) float32 (batch_first). Returns (B, OUTPUT_DIM) float32."""
    wih0w, bw, wfused, wfcw, bfc = kparams
    B, T, D = x.shape

    # pad batch to a sublane multiple so per-step slices and the output store are tile-aligned
    Bp = ((B + 7) // 8) * 8
    if Bp != B:
        x = jnp.pad(x, ((0, Bp - B), (0, 0), (0, 0)))

    # time-major & flattened so the prologue matmul covers all timesteps at once
    x_tm = jnp.transpose(x, (1, 0, 2)).reshape(T * Bp, D)

    kernel = functools.partial(_lstm_encoder_kernel, T, Bp)
    vmem = lambda: pl.BlockSpec(memory_space=pltpu.MemorySpace.VMEM)

    # NOTE(v7x): for large batches, add a leading 'parallel' grid axis over batch tiles
    # (dimension_semantics=("parallel",)) so both TensorCores are used, cap the per-tile
    # batch for the 64 MiB VMEM, and stage gxb in a VMEM scratch.  On single-TC v5e/v6e
    # prefer widening the per-call batch instead of adding grid steps (0.35 us/step).
    out = pl.pallas_call(
        kernel,
        out_shape=jax.ShapeDtypeStruct((Bp, OUTPUT_DIM), jnp.float32),
        in_specs=[vmem() for _ in range(6)],
        out_specs=vmem(),
    )(x_tm, wih0w, bw, wfused, wfcw, bfc)
    return out[:B]


# ----------------------------- parameter handling ------------------------------

def init_torch_params(key):
    """Synthetic params in PyTorch's native layout: (4H, in) weights, gate order [i,f,g,o],
    separate b_ih / b_hh, uniform(-1/sqrt(H), 1/sqrt(H))."""
    H = HIDDEN_DIM
    k = 1.0 / np.sqrt(H)
    keys = jax.random.split(key, 10)
    u = lambda kk, shape: jax.random.uniform(kk, shape, jnp.float32, -k, k)
    return dict(
        w_ih0=u(keys[0], (4 * H, INPUT_DIM)), w_hh0=u(keys[1], (4 * H, H)),
        b_ih0=u(keys[2], (4 * H,)),           b_hh0=u(keys[3], (4 * H,)),
        w_ih1=u(keys[4], (4 * H, H)),         w_hh1=u(keys[5], (4 * H, H)),
        b_ih1=u(keys[6], (4 * H,)),           b_hh1=u(keys[7], (4 * H,)),
        w_fc=u(keys[8], (OUTPUT_DIM, H)),     b_fc=u(keys[9], (OUTPUT_DIM,)),
    )


def _interleave_gates(w0, w1):
    """Interleave two gate-blocked (..., 4H) arrays (PyTorch gate order [i,f,g,o]) into
    (..., 8H) columns laid out as [i0 i1 | f0 f1 | o0 o1 | g0 g1]."""
    i0, f0, g0, o0 = jnp.split(w0, 4, axis=-1)
    i1, f1, g1, o1 = jnp.split(w1, 4, axis=-1)
    return jnp.concatenate([i0, i1, f0, f1, o0, o1, g0, g1], axis=-1)


def prep_kernel_params(tp):
    """PyTorch-layout params -> skewed/fused kernel layout (see kernel header)."""
    H = HIDDEN_DIM
    D = INPUT_DIM

    # widened prologue weight/bias: layer-0 lanes get Wih0 / b0, layer-1 lanes get 0 / b1
    wih0w = _interleave_gates(tp["w_ih0"].T, jnp.zeros((D, 4 * H), jnp.float32))      # (D, 8H)
    bw = _interleave_gates((tp["b_ih0"] + tp["b_hh0"])[None, :],
                           (tp["b_ih1"] + tp["b_hh1"])[None, :])                      # (1, 8H)

    # fused recurrent weight: [h0 | h1] @ W_fused = [h0@Whh0 | h0@Wih1 + h1@Whh1]
    w_top = _interleave_gates(tp["w_hh0"].T, tp["w_ih1"].T)                           # (H, 8H)
    w_bot = _interleave_gates(jnp.zeros((H, 4 * H), jnp.float32), tp["w_hh1"].T)      # (H, 8H)
    wfused = jnp.concatenate([w_top, w_bot], axis=0)                                  # (2H, 8H)

    # fc weight widened to read the carried [h0 | h1] state (layer-0 rows zeroed)
    wfcw = jnp.concatenate(
        [jnp.zeros((H, OUTPUT_DIM), jnp.float32), tp["w_fc"].T], axis=0)              # (2H, OUT)
    bfc = tp["b_fc"][None, :]                                                         # (1, OUT)
    return wih0w, bw, wfused, wfcw, bfc


# ------------------------------ pure-JAX reference -----------------------------

def reference_forward(x, tp):
    """Pure-JAX replica of the PyTorch module forward (PyTorch layout / gate order)."""
    H = HIDDEN_DIM
    hi = jax.lax.Precision.HIGHEST
    B, T, D = x.shape

    def cell(x_in, h, c, w_ih, w_hh, b_ih, b_hh):
        g = (jnp.dot(x_in, w_ih.T, precision=hi) + b_ih
             + jnp.dot(h, w_hh.T, precision=hi) + b_hh)
        i = jax.nn.sigmoid(g[:, 0 * H:1 * H])
        f = jax.nn.sigmoid(g[:, 1 * H:2 * H])
        gg = jnp.tanh(g[:, 2 * H:3 * H])
        o = jax.nn.sigmoid(g[:, 3 * H:4 * H])
        c_new = f * c + i * gg
        return o * jnp.tanh(c_new), c_new

    h0 = jnp.zeros((B, H), jnp.float32)
    c0 = jnp.zeros((B, H), jnp.float32)
    h1 = jnp.zeros((B, H), jnp.float32)
    c1 = jnp.zeros((B, H), jnp.float32)
    for t in range(T):
        xt = x[:, t, :]
        h0, c0 = cell(xt, h0, c0, tp["w_ih0"], tp["w_hh0"], tp["b_ih0"], tp["b_hh0"])
        h1, c1 = cell(h0, h1, c1, tp["w_ih1"], tp["w_hh1"], tp["b_ih1"], tp["b_hh1"])
    return jnp.dot(h1, tp["w_fc"].T, precision=hi) + tp["b_fc"]


if __name__ == "__main__":
    B, T = 4, 8
    key = jax.random.PRNGKey(0)
    k_x, k_p = jax.random.split(key)
    x = jax.random.normal(k_x, (B, T, INPUT_DIM), dtype=jnp.float32)

    torch_params = init_torch_params(k_p)
    kernel_params = prep_kernel_params(torch_params)

    out = jax.block_until_ready(lstm_encoder(x, kernel_params))
    assert out.shape == (B, OUTPUT_DIM), out.shape

    ref = jax.block_until_ready(reference_forward(x, torch_params))
    np.testing.assert_allclose(np.asarray(out), np.asarray(ref), rtol=1e-3, atol=1e-3)

    print("KERNEL_OK")
</pallas_src>

<mosaic_0001>
module attributes {stable_mosaic.version = 11 : i64} {
  func.func @_lstm_encoder_kernel(%arg0: memref<64x6xf32, #tpu.memory_space<vmem>>, %arg1: memref<6x512xf32, #tpu.memory_space<vmem>>, %arg2: memref<1x512xf32, #tpu.memory_space<vmem>>, %arg3: memref<128x512xf32, #tpu.memory_space<vmem>>, %arg4: memref<128x512xf32, #tpu.memory_space<vmem>>, %arg5: memref<1x512xf32, #tpu.memory_space<vmem>>, %arg6: memref<8x512xf32, #tpu.memory_space<vmem>>) attributes {dimension_semantics = [], scalar_prefetch = 0 : i64, scratch_operands = 0 : i64, tpu.core_type = #tpu.core_type<tc>} {
    %c0 = arith.constant 0 : index
    %c0_0 = arith.constant 0 : index
    %0 = vector.load %arg0[%c0, %c0_0] : memref<64x6xf32, #tpu.memory_space<vmem>>, vector<64x6xf32>
    %c0_1 = arith.constant 0 : index
    %c0_2 = arith.constant 0 : index
    %1 = vector.load %arg1[%c0_1, %c0_2] : memref<6x512xf32, #tpu.memory_space<vmem>>, vector<6x512xf32>
    %cst = arith.constant dense<0.000000e+00> : vector<64x512xf32>
    %2 = tpu.matmul %0, %1, %cst {dimension_numbers = #tpu.dot_dimension_numbers<[1], [0], [0], [1], [0, 0, 1, 1], [], []>} : vector<64x6xf32>, vector<6x512xf32>, vector<64x512xf32> -> vector<64x512xf32>
    %c0_3 = arith.constant 0 : index
    %c0_4 = arith.constant 0 : index
    %3 = vector.load %arg2[%c0_3, %c0_4] : memref<1x512xf32, #tpu.memory_space<vmem>>, vector<1x512xf32>
    %4 = vector.broadcast %3 : vector<1x512xf32> to vector<64x512xf32>
    %5 = arith.addf %2, %4 : vector<64x512xf32>
    %c0_5 = arith.constant 0 : index
    %c0_6 = arith.constant 0 : index
    %6 = vector.load %arg3[%c0_5, %c0_6] : memref<128x512xf32, #tpu.memory_space<vmem>>, vector<128x512xf32>
    %7 = tpu.iota {dimensions = array<i32: 1>} : vector<8x128xi32>
    %c64_i32 = arith.constant 64 : i32
    %8 = vector.broadcast %c64_i32 : i32 to vector<8x128xi32>
    %9 = arith.cmpi slt, %7, %8 : vector<8x128xi32>
    %10 = arith.extui %9 : vector<8x128xi1> to vector<8x128xi32>
    %11 = arith.sitofp %10 : vector<8x128xi32> to vector<8x128xf32>
    %cst_7 = arith.constant 0.000000e+00 : f32
    %12 = vector.broadcast %cst_7 : f32 to vector<8x128xf32>
    %cst_8 = arith.constant 0.000000e+00 : f32
    %13 = vector.broadcast %cst_8 : f32 to vector<8x128xf32>
    %cst_9 = arith.constant dense<0.000000e+00> : vector<8x512xf32>
    %14 = tpu.matmul %12, %6, %cst_9 {dimension_numbers = #tpu.dot_dimension_numbers<[1], [0], [0], [1], [0, 0, 1, 1], [], []>} : vector<8x128xf32>, vector<128x512xf32>, vector<8x512xf32> -> vector<8x512xf32>
    %15 = vector.extract_strided_slice %5 {offsets = [0, 0], sizes = [8, 512], strides = [1, 1]} : vector<64x512xf32> to vector<8x512xf32>
    %16 = arith.addf %14, %15 : vector<8x512xf32>
    %17 = vector.extract_strided_slice %16 {offsets = [0, 0], sizes = [8, 384], strides = [1, 1]} : vector<8x512xf32> to vector<8x384xf32>
    %18 = arith.negf %17 : vector<8x384xf32>
    %19 = math.exp %18 : vector<8x384xf32>
    %cst_10 = arith.constant 1.000000e+00 : f32
    %20 = vector.broadcast %cst_10 : f32 to vector<8x384xf32>
    %21 = arith.addf %20, %19 : vector<8x384xf32>
    %22 = arith.divf %20, %21 : vector<8x384xf32>
    %23 = vector.extract_strided_slice %16 {offsets = [0, 384], sizes = [8, 128], strides = [1, 1]} : vector<8x512xf32> to vector<8x128xf32>
    %24 = math.tanh %23 : vector<8x128xf32>
    %25 = vector.extract_strided_slice %22 {offsets = [0, 0], sizes = [8, 128], strides = [1, 1]} : vector<8x384xf32> to vector<8x128xf32>
    %26 = vector.extract_strided_slice %22 {offsets = [0, 128], sizes = [8, 128], strides = [1, 1]} : vector<8x384xf32> to vector<8x128xf32>
    %27 = vector.extract_strided_slice %22 {offsets = [0, 256], sizes = [8, 128], strides = [1, 1]} : vector<8x384xf32> to vector<8x128xf32>
    %28 = arith.mulf %26, %13 : vector<8x128xf32>
    %29 = arith.mulf %25, %24 : vector<8x128xf32>
    %30 = arith.addf %28, %29 : vector<8x128xf32>
    %31 = math.tanh %30 : vector<8x128xf32>
    %32 = arith.mulf %27, %31 : vector<8x128xf32>
    %33 = arith.mulf %32, %11 : vector<8x128xf32>
    %34 = arith.mulf %30, %11 : vector<8x128xf32>
    %cst_11 = arith.constant dense<0.000000e+00> : vector<8x512xf32>
    %35 = tpu.matmul %33, %6, %cst_11 {dimension_numbers = #tpu.dot_dimension_numbers<[1], [0], [0], [1], [0, 0, 1, 1], [], []>} : vector<8x128xf32>, vector<128x512xf32>, vector<8x512xf32> -> vector<8x512xf32>
    %36 = vector.extract_strided_slice %5 {offsets = [8, 0], sizes = [8, 512], strides = [1, 1]} : vector<64x512xf32> to vector<8x512xf32>
    %37 = arith.addf %35, %36 : vector<8x512xf32>
    %38 = vector.extract_strided_slice %37 {offsets = [0, 0], sizes = [8, 384], strides = [1, 1]} : vector<8x512xf32> to vector<8x384xf32>
    %39 = arith.negf %38 : vector<8x384xf32>
    %40 = math.exp %39 : vector<8x384xf32>
    %cst_12 = arith.constant 1.000000e+00 : f32
    %41 = vector.broadcast %cst_12 : f32 to vector<8x384xf32>
    %42 = arith.addf %41, %40 : vector<8x384xf32>
    %43 = arith.divf %41, %42 : vector<8x384xf32>
    %44 = vector.extract_strided_slice %37 {offsets = [0, 384], sizes = [8, 128], strides = [1, 1]} : vector<8x512xf32> to vector<8x128xf32>
    %45 = math.tanh %44 : vector<8x128xf32>
    %46 = vector.extract_strided_slice %43 {offsets = [0, 0], sizes = [8, 128], strides = [1, 1]} : vector<8x384xf32> to vector<8x128xf32>
    %47 = vector.extract_strided_slice %43 {offsets = [0, 128], sizes = [8, 128], strides = [1, 1]} : vector<8x384xf32> to vector<8x128xf32>
    %48 = vector.extract_strided_slice %43 {offsets = [0, 256], sizes = [8, 128], strides = [1, 1]} : vector<8x384xf32> to vector<8x128xf32>
    %49 = arith.mulf %47, %34 : vector<8x128xf32>
    %50 = arith.mulf %46, %45 : vector<8x128xf32>
    %51 = arith.addf %49, %50 : vector<8x128xf32>
    %52 = math.tanh %51 : vector<8x128xf32>
    %53 = arith.mulf %48, %52 : vector<8x128xf32>
    %cst_13 = arith.constant dense<0.000000e+00> : vector<8x512xf32>
    %54 = tpu.matmul %53, %6, %cst_13 {dimension_numbers = #tpu.dot_dimension_numbers<[1], [0], [0], [1], [0, 0, 1, 1], [], []>} : vector<8x128xf32>, vector<128x512xf32>, vector<8x512xf32> -> vector<8x512xf32>
    %55 = vector.extract_strided_slice %5 {offsets = [16, 0], sizes = [8, 512], strides = [1, 1]} : vector<64x512xf32> to vector<8x512xf32>
    %56 = arith.addf %54, %55 : vector<8x512xf32>
    %57 = vector.extract_strided_slice %56 {offsets = [0, 0], sizes = [8, 384], strides = [1, 1]} : vector<8x512xf32> to vector<8x384xf32>
    %58 = arith.negf %57 : vector<8x384xf32>
    %59 = math.exp %58 : vector<8x384xf32>
    %cst_14 = arith.constant 1.000000e+00 : f32
    %60 = vector.broadcast %cst_14 : f32 to vector<8x384xf32>
    %61 = arith.addf %60, %59 : vector<8x384xf32>
    %62 = arith.divf %60, %61 : vector<8x384xf32>
    %63 = vector.extract_strided_slice %56 {offsets = [0, 384], sizes = [8, 128], strides = [1, 1]} : vector<8x512xf32> to vector<8x128xf32>
    %64 = math.tanh %63 : vector<8x128xf32>
    %65 = vector.extract_strided_slice %62 {offsets = [0, 0], sizes = [8, 128], strides = [1, 1]} : vector<8x384xf32> to vector<8x128xf32>
    %66 = vector.extract_strided_slice %62 {offsets = [0, 128], sizes = [8, 128], strides = [1, 1]} : vector<8x384xf32> to vector<8x128xf32>
    %67 = vector.extract_strided_slice %62 {offsets = [0, 256], sizes = [8, 128], strides = [1, 1]} : vector<8x384xf32> to vector<8x128xf32>
    %68 = arith.mulf %66, %51 : vector<8x128xf32>
    %69 = arith.mulf %65, %64 : vector<8x128xf32>
    %70 = arith.addf %68, %69 : vector<8x128xf32>
    %71 = math.tanh %70 : vector<8x128xf32>
    %72 = arith.mulf %67, %71 : vector<8x128xf32>
    %cst_15 = arith.constant dense<0.000000e+00> : vector<8x512xf32>
    %73 = tpu.matmul %72, %6, %cst_15 {dimension_numbers = #tpu.dot_dimension_numbers<[1], [0], [0], [1], [0, 0, 1, 1], [], []>} : vector<8x128xf32>, vector<128x512xf32>, vector<8x512xf32> -> vector<8x512xf32>
    %74 = vector.extract_strided_slice %5 {offsets = [24, 0], sizes = [8, 512], strides = [1, 1]} : vector<64x512xf32> to vector<8x512xf32>
    %75 = arith.addf %73, %74 : vector<8x512xf32>
    %76 = vector.extract_strided_slice %75 {offsets = [0, 0], sizes = [8, 384], strides = [1, 1]} : vector<8x512xf32> to vector<8x384xf32>
    %77 = arith.negf %76 : vector<8x384xf32>
    %78 = math.exp %77 : vector<8x384xf32>
    %cst_16 = arith.constant 1.000000e+00 : f32
    %79 = vector.broadcast %cst_16 : f32 to vector<8x384xf32>
    %80 = arith.addf %79, %78 : vector<8x384xf32>
    %81 = arith.divf %79, %80 : vector<8x384xf32>
    %82 = vector.extract_strided_slice %75 {offsets = [0, 384], sizes = [8, 128], strides = [1, 1]} : vector<8x512xf32> to vector<8x128xf32>
    %83 = math.tanh %82 : vector<8x128xf32>
    %84 = vector.extract_strided_slice %81 {offsets = [0, 0], sizes = [8, 128], strides = [1, 1]} : vector<8x384xf32> to vector<8x128xf32>
    %85 = vector.extract_strided_slice %81 {offsets = [0, 128], sizes = [8, 128], strides = [1, 1]} : vector<8x384xf32> to vector<8x128xf32>
    %86 = vector.extract_strided_slice %81 {offsets = [0, 256], sizes = [8, 128], strides = [1, 1]} : vector<8x384xf32> to vector<8x128xf32>
    %87 = arith.mulf %85, %70 : vector<8x128xf32>
    %88 = arith.mulf %84, %83 : vector<8x128xf32>
    %89 = arith.addf %87, %88 : vector<8x128xf32>
    %90 = math.tanh %89 : vector<8x128xf32>
    %91 = arith.mulf %86, %90 : vector<8x128xf32>
    %cst_17 = arith.constant dense<0.000000e+00> : vector<8x512xf32>
    %92 = tpu.matmul %91, %6, %cst_17 {dimension_numbers = #tpu.dot_dimension_numbers<[1], [0], [0], [1], [0, 0, 1, 1], [], []>} : vector<8x128xf32>, vector<128x512xf32>, vector<8x512xf32> -> vector<8x512xf32>
    %93 = vector.extract_strided_slice %5 {offsets = [32, 0], sizes = [8, 512], strides = [1, 1]} : vector<64x512xf32> to vector<8x512xf32>
    %94 = arith.addf %92, %93 : vector<8x512xf32>
    %95 = vector.extract_strided_slice %94 {offsets = [0, 0], sizes = [8, 384], strides = [1, 1]} : vector<8x512xf32> to vector<8x384xf32>
    %96 = arith.negf %95 : vector<8x384xf32>
    %97 = math.exp %96 : vector<8x384xf32>
    %cst_18 = arith.constant 1.000000e+00 : f32
    %98 = vector.broadcast %cst_18 : f32 to vector<8x384xf32>
    %99 = arith.addf %98, %97 : vector<8x384xf32>
    %100 = arith.divf %98, %99 : vector<8x384xf32>
    %101 = vector.extract_strided_slice %94 {offsets = [0, 384], sizes = [8, 128], strides = [1, 1]} : vector<8x512xf32> to vector<8x128xf32>
    %102 = math.tanh %101 : vector<8x128xf32>
    %103 = vector.extract_strided_slice %100 {offsets = [0, 0], sizes = [8, 128], strides = [1, 1]} : vector<8x384xf32> to vector<8x128xf32>
    %104 = vector.extract_strided_slice %100 {offsets = [0, 128], sizes = [8, 128], strides = [1, 1]} : vector<8x384xf32> to vector<8x128xf32>
    %105 = vector.extract_strided_slice %100 {offsets = [0, 256], sizes = [8, 128], strides = [1, 1]} : vector<8x384xf32> to vector<8x128xf32>
    %106 = arith.mulf %104, %89 : vector<8x128xf32>
    %107 = arith.mulf %103, %102 : vector<8x128xf32>
    %108 = arith.addf %106, %107 : vector<8x128xf32>
    %109 = math.tanh %108 : vector<8x128xf32>
    %110 = arith.mulf %105, %109 : vector<8x128xf32>
    %cst_19 = arith.constant dense<0.000000e+00> : vector<8x512xf32>
    %111 = tpu.matmul %110, %6, %cst_19 {dimension_numbers = #tpu.dot_dimension_numbers<[1], [0], [0], [1], [0, 0, 1, 1], [], []>} : vector<8x128xf32>, vector<128x512xf32>, vector<8x512xf32> -> vector<8x512xf32>
    %112 = vector.extract_strided_slice %5 {offsets = [40, 0], sizes = [8, 512], strides = [1, 1]} : vector<64x512xf32> to vector<8x512xf32>
    %113 = arith.addf %111, %112 : vector<8x512xf32>
    %114 = vector.extract_strided_slice %113 {offsets = [0, 0], sizes = [8, 384], strides = [1, 1]} : vector<8x512xf32> to vector<8x384xf32>
    %115 = arith.negf %114 : vector<8x384xf32>
    %116 = math.exp %115 : vector<8x384xf32>
    %cst_20 = arith.constant 1.000000e+00 : f32
    %117 = vector.broadcast %cst_20 : f32 to vector<8x384xf32>
    %118 = arith.addf %117, %116 : vector<8x384xf32>
    %119 = arith.divf %117, %118 : vector<8x384xf32>
    %120 = vector.extract_strided_slice %113 {offsets = [0, 384], sizes = [8, 128], strides = [1, 1]} : vector<8x512xf32> to vector<8x128xf32>
    %121 = math.tanh %120 : vector<8x128xf32>
    %122 = vector.extract_strided_slice %119 {offsets = [0, 0], sizes = [8, 128], strides = [1, 1]} : vector<8x384xf32> to vector<8x128xf32>
    %123 = vector.extract_strided_slice %119 {offsets = [0, 128], sizes = [8, 128], strides = [1, 1]} : vector<8x384xf32> to vector<8x128xf32>
    %124 = vector.extract_strided_slice %119 {offsets = [0, 256], sizes = [8, 128], strides = [1, 1]} : vector<8x384xf32> to vector<8x128xf32>
    %125 = arith.mulf %123, %108 : vector<8x128xf32>
    %126 = arith.mulf %122, %121 : vector<8x128xf32>
    %127 = arith.addf %125, %126 : vector<8x128xf32>
    %128 = math.tanh %127 : vector<8x128xf32>
    %129 = arith.mulf %124, %128 : vector<8x128xf32>
    %cst_21 = arith.constant dense<0.000000e+00> : vector<8x512xf32>
    %130 = tpu.matmul %129, %6, %cst_21 {dimension_numbers = #tpu.dot_dimension_numbers<[1], [0], [0], [1], [0, 0, 1, 1], [], []>} : vector<8x128xf32>, vector<128x512xf32>, vector<8x512xf32> -> vector<8x512xf32>
    %131 = vector.extract_strided_slice %5 {offsets = [48, 0], sizes = [8, 512], strides = [1, 1]} : vector<64x512xf32> to vector<8x512xf32>
    %132 = arith.addf %130, %131 : vector<8x512xf32>
    %133 = vector.extract_strided_slice %132 {offsets = [0, 0], sizes = [8, 384], strides = [1, 1]} : vector<8x512xf32> to vector<8x384xf32>
    %134 = arith.negf %133 : vector<8x384xf32>
    %135 = math.exp %134 : vector<8x384xf32>
    %cst_22 = arith.constant 1.000000e+00 : f32
    %136 = vector.broadcast %cst_22 : f32 to vector<8x384xf32>
    %137 = arith.addf %136, %135 : vector<8x384xf32>
    %138 = arith.divf %136, %137 : vector<8x384xf32>
    %139 = vector.extract_strided_slice %132 {offsets = [0, 384], sizes = [8, 128], strides = [1, 1]} : vector<8x512xf32> to vector<8x128xf32>
    %140 = math.tanh %139 : vector<8x128xf32>
    %141 = vector.extract_strided_slice %138 {offsets = [0, 0], sizes = [8, 128], strides = [1, 1]} : vector<8x384xf32> to vector<8x128xf32>
    %142 = vector.extract_strided_slice %138 {offsets = [0, 128], sizes = [8, 128], strides = [1, 1]} : vector<8x384xf32> to vector<8x128xf32>
    %143 = vector.extract_strided_slice %138 {offsets = [0, 256], sizes = [8, 128], strides = [1, 1]} : vector<8x384xf32> to vector<8x128xf32>
    %144 = arith.mulf %142, %127 : vector<8x128xf32>
    %145 = arith.mulf %141, %140 : vector<8x128xf32>
    %146 = arith.addf %144, %145 : vector<8x128xf32>
    %147 = math.tanh %146 : vector<8x128xf32>
    %148 = arith.mulf %143, %147 : vector<8x128xf32>
    %cst_23 = arith.constant dense<0.000000e+00> : vector<8x512xf32>
    %149 = tpu.matmul %148, %6, %cst_23 {dimension_numbers = #tpu.dot_dimension_numbers<[1], [0], [0], [1], [0, 0, 1, 1], [], []>} : vector<8x128xf32>, vector<128x512xf32>, vector<8x512xf32> -> vector<8x512xf32>
    %150 = vector.extract_strided_slice %5 {offsets = [56, 0], sizes = [8, 512], strides = [1, 1]} : vector<64x512xf32> to vector<8x512xf32>
    %151 = arith.addf %149, %150 : vector<8x512xf32>
    %152 = vector.extract_strided_slice %151 {offsets = [0, 0], sizes = [8, 384], strides = [1, 1]} : vector<8x512xf32> to vector<8x384xf32>
    %153 = arith.negf %152 : vector<8x384xf32>
    %154 = math.exp %153 : vector<8x384xf32>
    %cst_24 = arith.constant 1.000000e+00 : f32
    %155 = vector.broadcast %cst_24 : f32 to vector<8x384xf32>
    %156 = arith.addf %155, %154 : vector<8x384xf32>
    %157 = arith.divf %155, %156 : vector<8x384xf32>
    %158 = vector.extract_strided_slice %151 {offsets = [0, 384], sizes = [8, 128], strides = [1, 1]} : vector<8x512xf32> to vector<8x128xf32>
    %159 = math.tanh %158 : vector<8x128xf32>
    %160 = vector.extract_strided_slice %157 {offsets = [0, 0], sizes = [8, 128], strides = [1, 1]} : vector<8x384xf32> to vector<8x128xf32>
    %161 = vector.extract_strided_slice %157 {offsets = [0, 128], sizes = [8, 128], strides = [1, 1]} : vector<8x384xf32> to vector<8x128xf32>
    %162 = vector.extract_strided_slice %157 {offsets = [0, 256], sizes = [8, 128], strides = [1, 1]} : vector<8x384xf32> to vector<8x128xf32>
    %163 = arith.mulf %161, %146 : vector<8x128xf32>
    %164 = arith.mulf %160, %159 : vector<8x128xf32>
    %165 = arith.addf %163, %164 : vector<8x128xf32>
    %166 = math.tanh %165 : vector<8x128xf32>
    %167 = arith.mulf %162, %166 : vector<8x128xf32>
    %cst_25 = arith.constant dense<0.000000e+00> : vector<8x512xf32>
    %168 = tpu.matmul %167, %6, %cst_25 {dimension_numbers = #tpu.dot_dimension_numbers<[1], [0], [0], [1], [0, 0, 1, 1], [], []>} : vector<8x128xf32>, vector<128x512xf32>, vector<8x512xf32> -> vector<8x512xf32>
    %169 = vector.extract_strided_slice %5 {offsets = [56, 0], sizes = [8, 512], strides = [1, 1]} : vector<64x512xf32> to vector<8x512xf32>
    %170 = arith.addf %168, %169 : vector<8x512xf32>
    %171 = vector.extract_strided_slice %170 {offsets = [0, 0], sizes = [8, 384], strides = [1, 1]} : vector<8x512xf32> to vector<8x384xf32>
    %172 = arith.negf %171 : vector<8x384xf32>
    %173 = math.exp %172 : vector<8x384xf32>
    %cst_26 = arith.constant 1.000000e+00 : f32
    %174 = vector.broadcast %cst_26 : f32 to vector<8x384xf32>
    %175 = arith.addf %174, %173 : vector<8x384xf32>
    %176 = arith.divf %174, %175 : vector<8x384xf32>
    %177 = vector.extract_strided_slice %170 {offsets = [0, 384], sizes = [8, 128], strides = [1, 1]} : vector<8x512xf32> to vector<8x128xf32>
    %178 = math.tanh %177 : vector<8x128xf32>
    %179 = vector.extract_strided_slice %176 {offsets = [0, 0], sizes = [8, 128], strides = [1, 1]} : vector<8x384xf32> to vector<8x128xf32>
    %180 = vector.extract_strided_slice %176 {offsets = [0, 128], sizes = [8, 128], strides = [1, 1]} : vector<8x384xf32> to vector<8x128xf32>
    %181 = vector.extract_strided_slice %176 {offsets = [0, 256], sizes = [8, 128], strides = [1, 1]} : vector<8x384xf32> to vector<8x128xf32>
    %182 = arith.mulf %180, %165 : vector<8x128xf32>
    %183 = arith.mulf %179, %178 : vector<8x128xf32>
    %184 = arith.addf %182, %183 : vector<8x128xf32>
    %185 = math.tanh %184 : vector<8x128xf32>
    %186 = arith.mulf %181, %185 : vector<8x128xf32>
    %c0_27 = arith.constant 0 : index
    %c0_28 = arith.constant 0 : index
    %187 = vector.load %arg4[%c0_27, %c0_28] : memref<128x512xf32, #tpu.memory_space<vmem>>, vector<128x512xf32>
    %cst_29 = arith.constant dense<0.000000e+00> : vector<8x512xf32>
    %188 = tpu.matmul %186, %187, %cst_29 {dimension_numbers = #tpu.dot_dimension_numbers<[1], [0], [0], [1], [0, 0, 1, 1], [], []>} : vector<8x128xf32>, vector<128x512xf32>, vector<8x512xf32> -> vector<8x512xf32>
    %c0_30 = arith.constant 0 : index
    %c0_31 = arith.constant 0 : index
    %189 = vector.load %arg5[%c0_30, %c0_31] : memref<1x512xf32, #tpu.memory_space<vmem>>, vector<1x512xf32>
    %190 = vector.broadcast %189 : vector<1x512xf32> to vector<8x512xf32>
    %191 = arith.addf %188, %190 : vector<8x512xf32>
    %c0_32 = arith.constant 0 : index
    %c0_33 = arith.constant 0 : index
    %192 = vector.load %arg6[%c0_32, %c0_33] : memref<8x512xf32, #tpu.memory_space<vmem>>, vector<8x512xf32>
    tpu.vector_store %arg6[%c0_32, %c0_33], %191 {strides = array<i32>} : memref<8x512xf32, #tpu.memory_space<vmem>>, vector<8x512xf32>,
    return
  }
}

</mosaic_0001>

<bundles_post_ra>
// kernel: tpu_custom_call.1
= control target key start
LH: loop header
LB: loop body
LE: loop exit
PB: predicated region body
PF: predicated region fallthrough
CT: control target
= control target key end

     0   :  { %11 = vsyncpa [#allocation3], 0  ;;  %s3776_s0 = inlined_call_operand.vmem [shape: f32[64,6], index: 0, kind: input, shape index: {}]   ;;  %s3777_s1 = inlined_call_operand.vmem [shape: f32[6,512], index: 1, kind: input, shape index: {}]   ;;  %s3778_s2 = inlined_call_operand.vmem [shape: f32[1,512], index: 2, kind: input, shape index: {}]   ;;  %s3779_s3 = inlined_call_operand.hbm [shape: f32[128,512], index: 3, kind: input, shape index: {}]   ;;  %s3780_s4 = inlined_call_operand.hbm [shape: f32[128,512], index: 4, kind: input, shape index: {}]   ;;  %s3781_s5 = inlined_call_operand.vmem [shape: f32[1,512], index: 5, kind: input, shape index: {}]   ;;  %s3782_s6 = inlined_call_operand.hbm [shape: f32[8,512], index: 6, kind: output, shape index: {}]  }
   0x1   :  { %12 = vsyncpa [#allocation6], 0 }
   0x2   :  { %13 = vsyncpa [#allocation4], 0  ;;  %s3129_s21 = smov [#allocation2]   ;;  %s3057_s25 = scalar_lea.hbm %s3779_s3, 8192 }
   0x3   :  { %s25_s22 = sshll.u32 %s3129_s21, 4  ;;  %p3058_p0 = scmp.ne.s32.totalorder %s3779_s3, %s3057_s25  ;;  %s26_s22 = int_to_ptr.vmem [resolvable:$true] %s25_s22 }
   0x4   :  { %p3061_p1 = scmp.lt.u32.totalorder %s3057_s25, %s3779_s3 }
   0x6   :  { %p3063_p2 = pnand %p3061_p1, %p3058_p0 }
   0x8   :  { %3066 = shalt.err (!%p3063_p2)
}
   0x9   :  { %s3067_s30 = scalar_lea.vmem %s26_s22, 8192  ;;  %p3072_p4 = scmp.lt.s32.totalorder %s26_s22, %s26_s22 }
   0xa   :  { %p3068_p3 = scmp.ne.s32.totalorder %s26_s22, %s3067_s30  ;;  %p3073_p5 = scmp.lt.s32.totalorder %s3067_s30, %s3067_s30 }
   0xc   :  { %p3074_p6 = por %p3073_p5, %p3072_p4 }
   0xe   :  { %p3075_p7 = pnand %p3074_p6, %p3068_p3 }
  0x10   :  { %3078 = shalt.err (!%p3075_p7)
}
  0x11   :  { %s3130_s7 = smov 512   ;;  %s3131_s8 = smov 32  }
  0x12   :  { %31 = dma.hbm_to_vmem [thread:$0]  %s3779_s3, 8192, %s26_s22, [#allocation3], %s3130_s7, %s3130_s7, %s3131_s8  }
  0x13   :  { %s3132_s11 = smov [#allocation5]   ;;  %s3079_s15 = scalar_lea.hbm %s3780_s4, 8192 }
  0x14   :  { %s37_s12 = sshll.u32 %s3132_s11, 4  ;;  %p3080_p8 = scmp.ne.s32.totalorder %s3780_s4, %s3079_s15  ;;  %s38_s12 = int_to_ptr.vmem [resolvable:$true] %s37_s12 }
  0x15   :  { %p3083_p9 = scmp.lt.u32.totalorder %s3079_s15, %s3780_s4 }
  0x17   :  { %p3085_p10 = pnand %p3083_p9, %p3080_p8 }
  0x19   :  { %3088 = shalt.err (!%p3085_p10)
}
  0x1a   :  { %s3089_s20 = scalar_lea.vmem %s38_s12, 8192  ;;  %p3094_p12 = scmp.lt.s32.totalorder %s38_s12, %s38_s12 }
  0x1b   :  { %p3090_p11 = scmp.ne.s32.totalorder %s38_s12, %s3089_s20  ;;  %p3095_p13 = scmp.lt.s32.totalorder %s3089_s20, %s3089_s20 }
  0x1d   :  { %p3096_p0 = por %p3095_p13, %p3094_p12 }
  0x1f   :  { %p3097_p1 = pnand %p3096_p0, %p3090_p11 }
  0x21   :  { %3100 = shalt.err (!%p3097_p1)
}
  0x22   :  { %43 = dma.hbm_to_vmem [thread:$0]  %s3780_s4, 8192, %s38_s12, [#allocation6], %s3130_s7, %s3130_s7, %s3131_s8  }
  0x23   :  { %3123 = dma.done.wait [#allocation3], 8192  }
  0x24   :  { %3124 = vsyncadd [#allocation3], 4294959104 }
  0x25   :  { %3125 = dma.done.wait [#allocation6], 8192  }
  0x26   :  { %3126 = vsyncadd [#allocation6], 4294959104  ;;  %v3133_v0 = vmov 0.0   ;;  %vm111_vm0 = vcmask 1045504   ;;  %vm86_vm1 = vcmask 48128   ;;  %v52_v5 = vld [vmem:[%s3776_s0] sm:$0xff] }
  0x27   :  { %188 = vmatprep.mubr.f32.mxu0 %v3133_v0  ;;  %301 = vmatprep.mubr.f32.mxu1 %v3133_v0  ;;  %v61_v1 = vld [vmem:[%s3777_s1 + $0x8] sm:$0x3f]  ;;  %v63_v2 = vld [vmem:[%s3777_s1 + $0x18] sm:$0x3f]  ;;  %v60_v3 = vld [vmem:[%s3777_s1] sm:$0x3f] }
  0x28   :  { %2163 = vmatprep.subr.msk.mxu0 %vm111_vm0, %v61_v1  ;;  %2173 = vmatprep.subr.msk.mxu1 %vm111_vm0, %v63_v2  ;;  %v62_v4 = vld [vmem:[%s3777_s1 + $0x10] sm:$0x3f]  ;;  %v351_v6 = vld [vmem:[#allocation2 + $0x8] sm:$0xff]  ;;  %v353_v8 = vld [vmem:[#allocation2 + $0x18] sm:$0xff]  ;;  %s3134_s21 = smov [#allocation7]  }
  0x29   :  { %2164 = vmatpush1.msk.msra.mxu0 %vm111_vm0, %v60_v3  ;;  %2174 = vmatpush1.msk.msra.mxu1 %vm111_vm0, %v62_v4  ;;  %v355_v7 = vld [vmem:[#allocation2 + $0x28] sm:$0xff]  ;;  %v357_v9 = vld [vmem:[#allocation2 + $0x38] sm:$0xff]  ;;  %v350_v12 = vld [vmem:[#allocation2] sm:$0xff]  ;;  %s2153_s22 = sshll.u32 %s3134_s21, 4  ;;  %s2154_s22 = int_to_ptr.vmem [resolvable:$true] %s2153_s22 }
  0x2a   :  { %2165 = vmatmul.mubr.msk.f32.vlgmr.msra.gmra.mrb[0].mxu0 %vm86_vm1, %v52_v5  ;;  %2175 = vmatmul.mubr.msk.f32.vlgmr.msra.gmra.mrb[0].mxu1 %vm86_vm1, %v52_v5  ;;  %v3213_v10 = vpack.c.bf16 %v355_v7, %v351_v6  ;;  %v3215_v11 = vpack.c.bf16 %v357_v9, %v353_v8  ;;  %v354_v13 = vld [vmem:[#allocation2 + $0x20] sm:$0xff]  ;;  %v352_v14 = vld [vmem:[#allocation2 + $0x10] sm:$0xff]  ;;  %v53_v17 = vld [vmem:[%s3776_s0 + $0x8] sm:$0xff]  ;;  %p3106_p3 = scmp.lt.s32.totalorder %s2154_s22, %s2154_s22 }
  0x2b   :  { %v3217_v15 = vpack.c.bf16 %v354_v13, %v350_v12  ;;  %v356_v16 = vld [vmem:[#allocation2 + $0x30] sm:$0xff]  ;;  %194 = vmatprep.mubr.f32.mxu0 %v3133_v0  ;;  %307 = vmatprep.mubr.f32.mxu1 %v3133_v0  ;;  %v359_v18 = vld [vmem:[#allocation2 + $0x48] sm:$0xff]  ;;  %v361_v21 = vld [vmem:[#allocation2 + $0x58] sm:$0xff] }
  0x2c   :  { %2212 = vmatprep.subr.bf16.mxu0 %v3213_v10  ;;  %2244 = vmatprep.subr.bf16.mxu1 %v3215_v11  ;;  %v3226_v19 = vpack.c.bf16 %v356_v16, %v352_v14  ;;  %v363_v20 = vld [vmem:[#allocation2 + $0x68] sm:$0xff]  ;;  %v365_v22 = vld [vmem:[#allocation2 + $0x78] sm:$0xff]  ;;  %v358_v25 = vld [vmem:[#allocation2 + $0x40] sm:$0xff] }
  0x2d   :  { %2214 = vmatpush1.bf16.msra.mxu0 %v3217_v15  ;;  %v3229_v23 = vpack.c.bf16 %v363_v20, %v359_v18  ;;  %v3231_v24 = vpack.c.bf16 %v365_v22, %v361_v21  ;;  %v362_v26 = vld [vmem:[#allocation2 + $0x60] sm:$0xff]  ;;  %v360_v27 = vld [vmem:[#allocation2 + $0x50] sm:$0xff]  ;;  %v367_v31 = vld [vmem:[#allocation2 + $0x88] sm:$0xff] }
  0x2e   :  { %2246 = vmatpush1.bf16.msra.mxu1 %v3226_v19  ;;  %2166 = vmatmul.mubr.msk.f32.gmra.mrb[2].mxu0 %vm86_vm1, %v53_v17  ;;  %v3235_v28 = vpack.c.bf16 %v362_v26, %v358_v25  ;;  %v364_v29 = vld [vmem:[#allocation2 + $0x70] sm:$0xff]  ;;  %v371_v33 = vld [vmem:[#allocation2 + $0xa8] sm:$0xff]  ;;  %v369_v34 = vld [vmem:[#allocation2 + $0x98] sm:$0xff] }
  0x2f   :  { %v54_v30 = vld [vmem:[%s3776_s0 + $0x10] sm:$0xff]  ;;  %2176 = vmatmul.mubr.msk.f32.gmra.mrb[2].mxu1 %vm86_vm1, %v53_v17  ;;  %2216 = vmatprep.subr.bf16.mxu0 %v3229_v23  ;;  %v3242_v32 = vpack.c.bf16 %v364_v29, %v360_v27  ;;  %v373_v35 = vld [vmem:[#allocation2 + $0xb8] sm:$0xff]  ;;  %v3246_v36 = vpack.c.bf16 %v371_v33, %v367_v31  ;;  %v366_v38 = vld [vmem:[#allocation2 + $0x80] sm:$0xff] }
  0x30   :  { %2248 = vmatprep.subr.bf16.mxu1 %v3231_v24  ;;  %200 = vmatprep.mubr.f32.mxu0 %v3133_v0  ;;  %v3248_v37 = vpack.c.bf16 %v373_v35, %v369_v34  ;;  %v370_v39 = vld [vmem:[#allocation2 + $0xa0] sm:$0xff]  ;;  %v368_v40 = vld [vmem:[#allocation2 + $0x90] sm:$0xff]  ;;  %v55_v43 = vld [vmem:[%s3776_s0 + $0x18] sm:$0xff] }
  0x31   :  { %2218 = vmatpush1.bf16.msra.mxu0 %v3235_v28  ;;  %313 = vmatprep.mubr.f32.mxu1 %v3133_v0  ;;  %v3252_v41 = vpack.c.bf16 %v370_v39, %v366_v38  ;;  %v372_v42 = vld [vmem:[#allocation2 + $0xb0] sm:$0xff]  ;;  %v375_v44 = vld [vmem:[#allocation2 + $0xc8] sm:$0xff]  ;;  %v377_v47 = vld [vmem:[#allocation2 + $0xd8] sm:$0xff] }
  0x32   :  { %2250 = vmatpush1.bf16.msra.mxu1 %v3242_v32  ;;  %2167 = vmatmul.mubr.msk.f32.gmra.mrb[4].mxu0 %vm86_vm1, %v54_v30  ;;  %v3259_v45 = vpack.c.bf16 %v372_v42, %v368_v40  ;;  %v379_v46 = vld [vmem:[#allocation2 + $0xe8] sm:$0xff]  ;;  %v381_v48 = vld [vmem:[#allocation2 + $0xf8] sm:$0xff]  ;;  %v374_v50 = vld [vmem:[#allocation2 + $0xc0] sm:$0xff] }
  0x33   :  { %2177 = vmatmul.mubr.msk.f32.gmra.mrb[4].mxu1 %vm86_vm1, %v54_v30  ;;  %2220 = vmatprep.subr.bf16.mxu0 %v3246_v36  ;;  %v3263_v49 = vpack.c.bf16 %v379_v46, %v375_v44  ;;  %v378_v51 = vld [vmem:[#allocation2 + $0xe0] sm:$0xff]  ;;  %v376_v52 = vld [vmem:[#allocation2 + $0xd0] sm:$0xff]  ;;  %v3267_v53 = vpack.c.bf16 %v381_v48, %v377_v47  ;;  %v383_v55 = vld [vmem:[#allocation2 + $0x108] sm:$0xff] }
  0x34   :  { %2252 = vmatprep.subr.bf16.mxu1 %v3248_v37  ;;  %206 = vmatprep.mubr.f32.mxu0 %v3133_v0  ;;  %v380_v54 = vld [vmem:[#allocation2 + $0xf0] sm:$0xff]  ;;  %v3271_v56 = vpack.c.bf16 %v378_v51, %v374_v50  ;;  %v387_v57 = vld [vmem:[#allocation2 + $0x128] sm:$0xff]  ;;  %v385_v58 = vld [vmem:[#allocation2 + $0x118] sm:$0xff] }
  0x35   :  { %2222 = vmatpush1.bf16.msra.mxu0 %v3252_v41  ;;  %319 = vmatprep.mubr.f32.mxu1 %v3133_v0  ;;  %v389_v59 = vld [vmem:[#allocation2 + $0x138] sm:$0xff]  ;;  %v3275_v60 = vpack.c.bf16 %v380_v54, %v376_v52  ;;  %v382_v61 = vld [vmem:[#allocation2 + $0x100] sm:$0xff]  ;;  %v3282_v1 = vpack.c.bf16 %v387_v57, %v383_v55  ;;  %v384_v2 = vld [vmem:[#allocation2 + $0x110] sm:$0xff] }
  0x36   :  { %2254 = vmatpush1.bf16.msra.mxu1 %v3259_v45  ;;  %2168 = vmatmul.mubr.msk.f32.gmra.mrb[6].mxu0 %vm86_vm1, %v55_v43  ;;  %v386_v62 = vld [vmem:[#allocation2 + $0x120] sm:$0xff]  ;;  %v388_v3 = vld [vmem:[#allocation2 + $0x130] sm:$0xff]  ;;  %v3286_v4 = vpack.c.bf16 %v389_v59, %v385_v58  ;;  %v391_v5 = vld [vmem:[#allocation2 + $0x148] sm:$0xff] }
  0x37   :  { %2178 = vmatmul.mubr.msk.f32.gmra.mrb[6].mxu1 %vm86_vm1, %v55_v43  ;;  %2224 = vmatprep.subr.bf16.mxu0 %v3263_v49  ;;  %v56_v63 = vld [vmem:[%s3776_s0 + $0x20] sm:$0xff]  ;;  %v395_v6 = vld [vmem:[#allocation2 + $0x168] sm:$0xff]  ;;  %v3290_v7 = vpack.c.bf16 %v386_v62, %v382_v61  ;;  %v393_v8 = vld [vmem:[#allocation2 + $0x158] sm:$0xff]  ;;  %v3294_v12 = vpack.c.bf16 %v388_v3, %v384_v2  ;;  %v66_v62 = vlaneseq }
  0x38   :  { %2256 = vmatprep.subr.bf16.mxu1 %v3267_v53  ;;  %212 = vmatprep.mubr.f32.mxu0 %v3133_v0  ;;  %v397_v9 = vld [vmem:[#allocation2 + $0x178] sm:$0xff]  ;;  %v390_v13 = vld [vmem:[#allocation2 + $0x140] sm:$0xff]  ;;  %v57_v16 = vld [vmem:[%s3776_s0 + $0x28] sm:$0xff]  ;;  %v3301_v17 = vpack.c.bf16 %v395_v6, %v391_v5 }
  0x39   :  { %2226 = vmatpush1.bf16.msra.mxu0 %v3271_v56  ;;  %325 = vmatprep.mubr.f32.mxu1 %v3133_v0  ;;  %v394_v14 = vld [vmem:[#allocation2 + $0x160] sm:$0xff]  ;;  %v392_v18 = vld [vmem:[#allocation2 + $0x150] sm:$0xff]  ;;  %v3305_v21 = vpack.c.bf16 %v397_v9, %v393_v8  ;;  %v399_v22 = vld [vmem:[#allocation2 + $0x188] sm:$0xff] }
  0x3a   :  { %2258 = vmatpush1.bf16.msra.mxu1 %v3275_v60  ;;  %2169 = vmatmul.mubr.msk.f32.gmra.mrb[8].mxu0 %vm86_vm1, %v56_v63  ;;  %v396_v20 = vld [vmem:[#allocation2 + $0x170] sm:$0xff]  ;;  %v403_v25 = vld [vmem:[#allocation2 + $0x1a8] sm:$0xff]  ;;  %v3309_v26 = vpack.c.bf16 %v394_v14, %v390_v13  ;;  %v401_v27 = vld [vmem:[#allocation2 + $0x198] sm:$0xff] }
  0x3b   :  { %2179 = vmatmul.mubr.msk.f32.gmra.mrb[8].mxu1 %vm86_vm1, %v56_v63  ;;  %2228 = vmatprep.subr.bf16.mxu0 %v3282_v1  ;;  %v405_v29 = vld [vmem:[#allocation2 + $0x1b8] sm:$0xff]  ;;  %v3313_v30 = vpack.c.bf16 %v396_v20, %v392_v18  ;;  %v398_v31 = vld [vmem:[#allocation2 + $0x180] sm:$0xff]  ;;  %v58_v34 = vld [vmem:[%s3776_s0 + $0x30] sm:$0xff]  ;;  %v3320_v35 = vpack.c.bf16 %v403_v25, %v399_v22  ;;  %v3398_v63 = vshrl.u32 %v66_v62, 7 }
  0x3c   :  { %2260 = vmatprep.subr.bf16.mxu1 %v3286_v4  ;;  %218 = vmatprep.mubr.f32.mxu0 %v3133_v0  ;;  %v402_v33 = vld [vmem:[#allocation2 + $0x1a0] sm:$0xff]  ;;  %v400_v38 = vld [vmem:[#allocation2 + $0x190] sm:$0xff]  ;;  %v3324_v40 = vpack.c.bf16 %v405_v29, %v401_v27  ;;  %v407_v42 = vld [vmem:[#allocation2 + $0x1c8] sm:$0xff] }
  0x3d   :  { %2230 = vmatpush1.bf16.msra.mxu0 %v3290_v7  ;;  %331 = vmatprep.mubr.f32.mxu1 %v3133_v0  ;;  %v404_v39 = vld [vmem:[#allocation2 + $0x1b0] sm:$0xff]  ;;  %v411_v43 = vld [vmem:[#allocation2 + $0x1e8] sm:$0xff]  ;;  %v3328_v44 = vpack.c.bf16 %v402_v33, %v398_v31  ;;  %v409_v46 = vld [vmem:[#allocation2 + $0x1d8] sm:$0xff]  ;;  %v68_v3 = vsub.s32 0, %v3398_v63  ;;  %v72_v9 = vsub.s32 1, %v3398_v63  ;;  %v76_v18 = vsub.s32 2, %v3398_v63 }
  0x3e   :  { %2262 = vmatpush1.bf16.msra.mxu1 %v3294_v12  ;;  %2170 = vmatmul.mubr.msk.f32.gmra.mrb[10].mxu0 %vm86_vm1, %v57_v16  ;;  %v413_v47 = vld [vmem:[#allocation2 + $0x1f8] sm:$0xff]  ;;  %v3332_v48 = vpack.c.bf16 %v404_v39, %v400_v38  ;;  %v406_v50 = vld [vmem:[#allocation2 + $0x1c0] sm:$0xff]  ;;  %v3339_v54 = vpack.c.bf16 %v411_v43, %v407_v42  ;;  %v408_v55 = vld [vmem:[#allocation2 + $0x1d0] sm:$0xff]  ;;  %v80_v39 = vsub.s32 3, %v3398_v63 }
  0x3f   :  { %2180 = vmatmul.mubr.msk.f32.gmra.mrb[10].mxu1 %vm86_vm1, %v57_v16  ;;  %2232 = vmatprep.subr.bf16.mxu0 %v3301_v17  ;;  %v410_v51 = vld [vmem:[#allocation2 + $0x1e0] sm:$0xff]  ;;  %v59_v52 = vld [vmem:[%s3776_s0 + $0x38] sm:$0xff]  ;;  %v412_v57 = vld [vmem:[#allocation2 + $0x1f0] sm:$0xff]  ;;  %v3343_v58 = vpack.c.bf16 %v413_v47, %v409_v46 }
  0x40   :  { %2264 = vmatprep.subr.bf16.mxu1 %v3305_v21  ;;  %224 = vmatprep.mubr.f32.mxu0 %v3133_v0  ;;  %v3347_v59 = vpack.c.bf16 %v410_v51, %v406_v50  ;;  %v3351_v61 = vpack.c.bf16 %v412_v57, %v408_v55  ;;  %v64_v8 = vld [vmem:[%s3778_s2] sm:$0xf]  ;;  %v415_v57 = vand.u32 127, %v66_v62 }
  0x41   :  { %2234 = vmatpush1.bf16.msra.mxu0 %v3309_v26  ;;  %337 = vmatprep.mubr.f32.mxu1 %v3133_v0  ;;  %v3415_v14 = vrot.slane %v64_v8, %v68_v3  ;;  %v3419_v16 = vrot.slane %v64_v8, %v72_v9  ;;  %v3432_v43 = vrot.slane %v64_v8, %v80_v39 }
  0x42   :  { %2266 = vmatpush1.bf16.msra.mxu1 %v3313_v30  ;;  %2171 = vmatmul.mubr.msk.f32.gmra.mrb[12].mxu0 %vm86_vm1, %v58_v34  ;;  %vm416_vm2 = vcmp.lt.s32.totalorder %v415_v57, 64 }
  0x43   :  { %2181 = vmatmul.mubr.msk.f32.gmra.mrb[12].mxu1 %vm86_vm1, %v58_v34  ;;  %2236 = vmatprep.subr.bf16.mxu0 %v3320_v35  ;;  %v3426_v34 = vrot.slane %v64_v8, %v76_v18 }
  0x44   :  { %2268 = vmatprep.subr.bf16.mxu1 %v3324_v40  ;;  %230 = vmatprep.mubr.f32.mxu0 %v3133_v0 }
  0x45   :  { %2238 = vmatpush1.bf16.msra.mxu0 %v3328_v44  ;;  %343 = vmatprep.mubr.f32.mxu1 %v3133_v0 }
  0x46   :  { %2270 = vmatpush1.bf16.msra.mxu1 %v3332_v48  ;;  %2172 = vmatmul.mubr.msk.f32.gmra.mrb[14].mxu0 %vm86_vm1, %v59_v52 }
  0x47   :  { %2182 = vmatmul.mubr.msk.f32.gmra.mrb[14].mxu1 %vm86_vm1, %v59_v52  ;;  %2240 = vmatprep.subr.bf16.mxu0 %v3339_v54 }
  0x48   :  { %2272 = vmatprep.subr.bf16.mxu1 %v3343_v58  ;;  %483 = vmatprep.mubr.f32.mxu0 %v3133_v0 }
  0x49   :  { %2242 = vmatpush1.bf16.msra.mxu0 %v3347_v59  ;;  %554 = vmatprep.mubr.f32.mxu1 %v3133_v0 }
  0x4a   :  { %2274 = vmatpush1.bf16.msra.mxu1 %v3351_v61  ;;  %2276 = vmatprep.subr.bf16.mxu0 %v3213_v10 }
  0x4b   :  { %2308 = vmatprep.subr.bf16.mxu1 %v3215_v11 }
  0x4c   :  { %484 = vmatmul.mubr.f32.vlgmr.msra.gmra.mrb[0].mxu0 %v3133_v0 }
  0x4d   :  { %555 = vmatmul.mubr.f32.vlgmr.msra.gmra.mrb[0].mxu1 %v3133_v0  ;;  %2278 = vmatpush1.bf16.msra.mxu0 %v3217_v15 }
  0x4e   :  { %2310 = vmatpush1.bf16.msra.mxu1 %v3226_v19  ;;  %2280 = vmatprep.subr.bf16.mxu0 %v3229_v23 }
  0x4f   :  { %2312 = vmatprep.subr.bf16.mxu1 %v3231_v24  ;;  %651 = vmatprep.mubr.f32.mxu0 %v3133_v0 }
  0x50   :  { %722 = vmatprep.mubr.f32.mxu1 %v3133_v0 }
  0x51   :  { %2282 = vmatpush1.bf16.msra.mxu0 %v3235_v28 }
  0x52   :  { %2314 = vmatpush1.bf16.msra.mxu1 %v3242_v32  ;;  %2284 = vmatprep.subr.bf16.mxu0 %v3246_v36 }
  0x53   :  { %2316 = vmatprep.subr.bf16.mxu1 %v3248_v37 }
  0x55   :  { %2286 = vmatpush1.bf16.msra.mxu0 %v3252_v41 }
  0x56   :  { %2318 = vmatpush1.bf16.msra.mxu1 %v3259_v45  ;;  %2288 = vmatprep.subr.bf16.mxu0 %v3263_v49 }
  0x57   :  { %2320 = vmatprep.subr.bf16.mxu1 %v3267_v53 }
  0x59   :  { %2290 = vmatpush1.bf16.msra.mxu0 %v3271_v56 }
  0x5a   :  { %2322 = vmatpush1.bf16.msra.mxu1 %v3275_v60  ;;  %2292 = vmatprep.subr.bf16.mxu0 %v3282_v1 }
  0x5b   :  { %2324 = vmatprep.subr.bf16.mxu1 %v3286_v4 }
  0x5d   :  { %2294 = vmatpush1.bf16.msra.mxu0 %v3290_v7 }
  0x5e   :  { %2326 = vmatpush1.bf16.msra.mxu1 %v3294_v12  ;;  %2296 = vmatprep.subr.bf16.mxu0 %v3301_v17 }
  0x5f   :  { %2328 = vmatprep.subr.bf16.mxu1 %v3305_v21 }
  0x61   :  { %2298 = vmatpush1.bf16.msra.mxu0 %v3309_v26 }
  0x62   :  { %2330 = vmatpush1.bf16.msra.mxu1 %v3313_v30  ;;  %2300 = vmatprep.subr.bf16.mxu0 %v3320_v35 }
  0x63   :  { %2332 = vmatprep.subr.bf16.mxu1 %v3324_v40 }
  0x65   :  { %2302 = vmatpush1.bf16.msra.mxu0 %v3328_v44 }
  0x66   :  { %2334 = vmatpush1.bf16.msra.mxu1 %v3332_v48  ;;  %2304 = vmatprep.subr.bf16.mxu0 %v3339_v54 }
  0x67   :  { %2336 = vmatprep.subr.bf16.mxu1 %v3343_v58 }
  0x69   :  { %2306 = vmatpush1.bf16.msra.mxu0 %v3347_v59 }
  0x6a   :  { %2338 = vmatpush1.bf16.msra.mxu1 %v3351_v61  ;;  %2340 = vmatprep.subr.bf16.mxu0 %v3213_v10 }
  0x6b   :  { %2372 = vmatprep.subr.bf16.mxu1 %v3215_v11 }
 0x119   :  { %v3400_v2 = vpop.f32.mrb[14].mxu0 }
 0x11a   :  { %v3403_v5 = vpop.f32.mrb[15].mxu0  ;;  %v3405_v6 = vpop.f32.mrb[14].mxu1 }
 0x11b   :  { %v3411_v13 = vpop.f32.mrb[15].mxu1 }
 0x11f   :  { %v485_v20 = vpop.f32.mrb[0].mxu0 }
 0x120   :  { %v2851_v22 = vadd.f32 %v485_v20, %v3415_v14  ;;  %v556_v25 = vpop.f32.mrb[0].mxu1  ;;  %v487_v27 = vpop.f32.mrb[1].mxu0 }
 0x121   :  { %v2852_v29 = vadd.f32 %v487_v27, %v3419_v16  ;;  %v558_v31 = vpop.f32.mrb[1].mxu1  ;;  %v2865_v42 = vadd.f32 %v556_v25, %v3426_v34 }
 0x122   :  { %v2184_v33 = vmul.f32 -1.442695, %v2851_v22  ;;  %v2866_v47 = vadd.f32 %v558_v31, %v3432_v43 }
 0x123   :  { %v2185_v38 = vmul.f32 -1.442695, %v2852_v29  ;;  %v2186_v46 = vmul.f32 -1.442695, %v2865_v42 }
 0x124   :  { %2913 = vpow2.f32 %v2184_v33 }
 0x125   :  { %2915 = vpow2.f32 %v2185_v38  ;;  %v2183_v38 = vsel %vm416_vm2, 1.0, %v3133_v0 }
 0x126   :  { %2917 = vpow2.f32 %v2186_v46 }
 0x127   :  { %2919 = vtanh.f32 %v2866_v47 }
 0x12e   :  { %v2914_v50 = vpop.eup %2913 }
 0x12f   :  { %v570_v51 = vadd.f32 1.0, %v2914_v50  ;;  %v2916_v52 = vpop.eup %2915 }
 0x130   :  { %v571_v55 = vadd.f32 1.0, %v2916_v52  ;;  %v2918_v20 = vpop.eup %2917 }
 0x131   :  { %2921 = vrcp.f32 %v570_v51  ;;  %v2920_v22 = vpop.eup %2919  ;;  %v572_v8 = vadd.f32 1.0, %v2918_v20 }
 0x132   :  { %2923 = vrcp.f32 %v571_v55 }
 0x133   :  { %2925 = vrcp.f32 %v572_v8 }
 0x13b   :  { %v2922_v27 = vpop.eup %2921 }
 0x13c   :  { %v581_v25 = vmul.f32 %v2922_v27, %v2920_v22  ;;  %v2924_v29 = vpop.eup %2923 }
 0x13d   :  { %v580_v33 = vmul.f32 0.0, %v2924_v29  ;;  %v2926_v46 = vpop.eup %2925 }
 0x13f   :  { %v582_v31 = vadd.f32 %v581_v25, %v580_v33 }
 0x141   :  { %2927 = vtanh.f32 %v582_v31  ;;  %v3436_v42 = vmul.f32 %v2183_v38, %v582_v31 }
 0x14b   :  { %v2928_v47 = vpop.eup %2927 }
 0x14c   :  { %v584_v50 = vmul.f32 %v2928_v47, %v2926_v46 }
 0x14e   :  { %v585_v51 = vmul.f32 %v2183_v38, %v584_v50 }
 0x150   :  { %652 = vmatmul.mubr.f32.vlgmr.msra.gmra.mrb[2].mxu0 %v585_v51  ;;  %723 = vmatmul.mubr.f32.vlgmr.msra.gmra.mrb[2].mxu1 %v585_v51 }
 0x151   :  { %2342 = vmatpush1.bf16.msra.mxu0 %v3217_v15  ;;  %2374 = vmatpush1.bf16.msra.mxu1 %v3226_v19 }
 0x152   :  { %2344 = vmatprep.subr.bf16.mxu0 %v3229_v23  ;;  %2376 = vmatprep.subr.bf16.mxu1 %v3231_v24 }
 0x153   :  { %817 = vmatprep.mubr.f32.mxu0 %v3133_v0  ;;  %888 = vmatprep.mubr.f32.mxu1 %v3133_v0 }
 0x155   :  { %2346 = vmatpush1.bf16.msra.mxu0 %v3235_v28  ;;  %2378 = vmatpush1.bf16.msra.mxu1 %v3242_v32 }
 0x156   :  { %2348 = vmatprep.subr.bf16.mxu0 %v3246_v36  ;;  %2380 = vmatprep.subr.bf16.mxu1 %v3248_v37 }
 0x159   :  { %2350 = vmatpush1.bf16.msra.mxu0 %v3252_v41  ;;  %2382 = vmatpush1.bf16.msra.mxu1 %v3259_v45 }
 0x15a   :  { %2352 = vmatprep.subr.bf16.mxu0 %v3263_v49  ;;  %2384 = vmatprep.subr.bf16.mxu1 %v3267_v53 }
 0x15d   :  { %2354 = vmatpush1.bf16.msra.mxu0 %v3271_v56  ;;  %2386 = vmatpush1.bf16.msra.mxu1 %v3275_v60 }
 0x15e   :  { %2356 = vmatprep.subr.bf16.mxu0 %v3282_v1  ;;  %2388 = vmatprep.subr.bf16.mxu1 %v3286_v4 }
 0x161   :  { %2358 = vmatpush1.bf16.msra.mxu0 %v3290_v7  ;;  %2390 = vmatpush1.bf16.msra.mxu1 %v3294_v12 }
 0x162   :  { %2360 = vmatprep.subr.bf16.mxu0 %v3301_v17  ;;  %2392 = vmatprep.subr.bf16.mxu1 %v3305_v21 }
 0x165   :  { %2362 = vmatpush1.bf16.msra.mxu0 %v3309_v26  ;;  %2394 = vmatpush1.bf16.msra.mxu1 %v3313_v30 }
 0x166   :  { %2364 = vmatprep.subr.bf16.mxu0 %v3320_v35  ;;  %2396 = vmatprep.subr.bf16.mxu1 %v3324_v40 }
 0x169   :  { %2366 = vmatpush1.bf16.msra.mxu0 %v3328_v44  ;;  %2398 = vmatpush1.bf16.msra.mxu1 %v3332_v48 }
 0x16a   :  { %2368 = vmatprep.subr.bf16.mxu0 %v3339_v54  ;;  %2400 = vmatprep.subr.bf16.mxu1 %v3343_v58 }
 0x16d   :  { %2370 = vmatpush1.bf16.msra.mxu0 %v3347_v59  ;;  %2402 = vmatpush1.bf16.msra.mxu1 %v3351_v61 }
 0x16e   :  { %2404 = vmatprep.subr.bf16.mxu0 %v3213_v10  ;;  %2436 = vmatprep.subr.bf16.mxu1 %v3215_v11 }
 0x223   :  { %v653_v62 = vpop.f32.mrb[2].mxu0  ;;  %v724_v52 = vpop.f32.mrb[2].mxu1 }
 0x224   :  { %v2853_v55 = vadd.f32 %v653_v62, %v3415_v14  ;;  %v655_v57 = vpop.f32.mrb[3].mxu0  ;;  %v726_v20 = vpop.f32.mrb[3].mxu1  ;;  %v2867_v29 = vadd.f32 %v724_v52, %v3426_v34 }
 0x225   :  { %v2854_v22 = vadd.f32 %v655_v57, %v3419_v16  ;;  %v2868_v8 = vadd.f32 %v726_v20, %v3432_v43 }
 0x226   :  { %v2187_v27 = vmul.f32 -1.442695, %v2853_v55  ;;  %v2189_v33 = vmul.f32 -1.442695, %v2867_v29 }
 0x227   :  { %v2188_v25 = vmul.f32 -1.442695, %v2854_v22 }
 0x228   :  { %2929 = vpow2.f32 %v2187_v27 }
 0x229   :  { %2931 = vpow2.f32 %v2188_v25 }
 0x22a   :  { %2933 = vtanh.f32 %v2868_v8 }
 0x22b   :  { %2935 = vpow2.f32 %v2189_v33 }
 0x232   :  { %v2930_v38 = vpop.eup %2929 }
 0x233   :  { %v738_v31 = vadd.f32 1.0, %v2930_v38  ;;  %v2932_v46 = vpop.eup %2931 }
 0x234   :  { %v739_v47 = vadd.f32 1.0, %v2932_v46  ;;  %v2934_v50 = vpop.eup %2933 }
 0x235   :  { %2937 = vrcp.f32 %v738_v31  ;;  %v2936_v51 = vpop.eup %2935 }
 0x236   :  { %2939 = vrcp.f32 %v739_v47  ;;  %v740_v22 = vadd.f32 1.0, %v2936_v51 }
 0x238   :  { %2941 = vrcp.f32 %v740_v22 }
 0x23f   :  { %v2938_v62 = vpop.eup %2937 }
 0x240   :  { %v749_v55 = vmul.f32 %v2938_v62, %v2934_v50  ;;  %v2940_v57 = vpop.eup %2939 }
 0x241   :  { %v748_v27 = vmul.f32 %v2940_v57, %v3436_v42 }
 0x242   :  { %v2942_v20 = vpop.eup %2941 }
 0x243   :  { %v3477_v52 = vadd.f32 %v749_v55, %v748_v27 }
 0x245   :  { %2943 = vtanh.f32 %v3477_v52 }
 0x24f   :  { %v2944_v25 = vpop.eup %2943 }
 0x250   :  { %v752_v29 = vmul.f32 %v2944_v25, %v2942_v20 }
 0x252   :  { %818 = vmatmul.mubr.f32.vlgmr.msra.gmra.mrb[4].mxu0 %v752_v29  ;;  %889 = vmatmul.mubr.f32.vlgmr.msra.gmra.mrb[4].mxu1 %v752_v29 }
 0x253   :  { %2406 = vmatpush1.bf16.msra.mxu0 %v3217_v15  ;;  %2438 = vmatpush1.bf16.msra.mxu1 %v3226_v19 }
 0x254   :  { %2408 = vmatprep.subr.bf16.mxu0 %v3229_v23  ;;  %2440 = vmatprep.subr.bf16.mxu1 %v3231_v24 }
 0x255   :  { %983 = vmatprep.mubr.f32.mxu0 %v3133_v0  ;;  %1054 = vmatprep.mubr.f32.mxu1 %v3133_v0 }
 0x257   :  { %2410 = vmatpush1.bf16.msra.mxu0 %v3235_v28  ;;  %2442 = vmatpush1.bf16.msra.mxu1 %v3242_v32 }
 0x258   :  { %2412 = vmatprep.subr.bf16.mxu0 %v3246_v36  ;;  %2444 = vmatprep.subr.bf16.mxu1 %v3248_v37 }
 0x25b   :  { %2414 = vmatpush1.bf16.msra.mxu0 %v3252_v41  ;;  %2446 = vmatpush1.bf16.msra.mxu1 %v3259_v45 }
 0x25c   :  { %2416 = vmatprep.subr.bf16.mxu0 %v3263_v49  ;;  %2448 = vmatprep.subr.bf16.mxu1 %v3267_v53 }
 0x25f   :  { %2418 = vmatpush1.bf16.msra.mxu0 %v3271_v56  ;;  %2450 = vmatpush1.bf16.msra.mxu1 %v3275_v60 }
 0x260   :  { %2420 = vmatprep.subr.bf16.mxu0 %v3282_v1  ;;  %2452 = vmatprep.subr.bf16.mxu1 %v3286_v4 }
 0x263   :  { %2422 = vmatpush1.bf16.msra.mxu0 %v3290_v7  ;;  %2454 = vmatpush1.bf16.msra.mxu1 %v3294_v12 }
 0x264   :  { %2424 = vmatprep.subr.bf16.mxu0 %v3301_v17  ;;  %2456 = vmatprep.subr.bf16.mxu1 %v3305_v21 }
 0x267   :  { %2426 = vmatpush1.bf16.msra.mxu0 %v3309_v26  ;;  %2458 = vmatpush1.bf16.msra.mxu1 %v3313_v30 }
 0x268   :  { %2428 = vmatprep.subr.bf16.mxu0 %v3320_v35  ;;  %2460 = vmatprep.subr.bf16.mxu1 %v3324_v40 }
 0x26b   :  { %2430 = vmatpush1.bf16.msra.mxu0 %v3328_v44  ;;  %2462 = vmatpush1.bf16.msra.mxu1 %v3332_v48 }
 0x26c   :  { %2432 = vmatprep.subr.bf16.mxu0 %v3339_v54  ;;  %2464 = vmatprep.subr.bf16.mxu1 %v3343_v58 }
 0x26f   :  { %2434 = vmatpush1.bf16.msra.mxu0 %v3347_v59  ;;  %2466 = vmatpush1.bf16.msra.mxu1 %v3351_v61 }
 0x270   :  { %2468 = vmatprep.subr.bf16.mxu0 %v3213_v10  ;;  %2500 = vmatprep.subr.bf16.mxu1 %v3215_v11 }
 0x325   :  { %v819_v42 = vpop.f32.mrb[4].mxu0  ;;  %v890_v8 = vpop.f32.mrb[4].mxu1 }
 0x326   :  { %v2855_v33 = vadd.f32 %v819_v42, %v3415_v14  ;;  %v821_v38 = vpop.f32.mrb[5].mxu0  ;;  %v892_v31 = vpop.f32.mrb[5].mxu1  ;;  %v2869_v51 = vadd.f32 %v890_v8, %v3426_v34 }
 0x327   :  { %v2856_v46 = vadd.f32 %v821_v38, %v3419_v16  ;;  %v2870_v62 = vadd.f32 %v892_v31, %v3432_v43 }
 0x328   :  { %v2190_v47 = vmul.f32 -1.442695, %v2855_v33  ;;  %v2192_v55 = vmul.f32 -1.442695, %v2869_v51 }
 0x329   :  { %v2191_v50 = vmul.f32 -1.442695, %v2856_v46 }
 0x32a   :  { %2945 = vpow2.f32 %v2190_v47 }
 0x32b   :  { %2947 = vpow2.f32 %v2191_v50 }
 0x32c   :  { %2949 = vtanh.f32 %v2870_v62 }
 0x32d   :  { %2951 = vpow2.f32 %v2192_v55 }
 0x334   :  { %v2946_v57 = vpop.eup %2945 }
 0x335   :  { %v904_v22 = vadd.f32 1.0, %v2946_v57  ;;  %v2948_v27 = vpop.eup %2947 }
 0x336   :  { %v905_v20 = vadd.f32 1.0, %v2948_v27  ;;  %v2950_v25 = vpop.eup %2949 }
 0x337   :  { %2953 = vrcp.f32 %v904_v22  ;;  %v2952_v29 = vpop.eup %2951 }
 0x338   :  { %2955 = vrcp.f32 %v905_v20  ;;  %v906_v46 = vadd.f32 1.0, %v2952_v29 }
 0x33a   :  { %2957 = vrcp.f32 %v906_v46 }
 0x341   :  { %v2954_v42 = vpop.eup %2953 }
 0x342   :  { %v915_v33 = vmul.f32 %v2954_v42, %v2950_v25  ;;  %v2956_v38 = vpop.eup %2955 }
 0x343   :  { %v914_v47 = vmul.f32 %v2956_v38, %v3477_v52 }
 0x344   :  { %v2958_v31 = vpop.eup %2957 }
 0x345   :  { %v3519_v8 = vadd.f32 %v915_v33, %v914_v47 }
 0x347   :  { %2959 = vtanh.f32 %v3519_v8 }
 0x351   :  { %v2960_v50 = vpop.eup %2959 }
 0x352   :  { %v918_v51 = vmul.f32 %v2960_v50, %v2958_v31 }
 0x354   :  { %984 = vmatmul.mubr.f32.vlgmr.msra.gmra.mrb[6].mxu0 %v918_v51  ;;  %1055 = vmatmul.mubr.f32.vlgmr.msra.gmra.mrb[6].mxu1 %v918_v51 }
 0x355   :  { %2470 = vmatpush1.bf16.msra.mxu0 %v3217_v15  ;;  %2502 = vmatpush1.bf16.msra.mxu1 %v3226_v19 }
 0x356   :  { %2472 = vmatprep.subr.bf16.mxu0 %v3229_v23  ;;  %2504 = vmatprep.subr.bf16.mxu1 %v3231_v24 }
 0x357   :  { %1149 = vmatprep.mubr.f32.mxu0 %v3133_v0  ;;  %1220 = vmatprep.mubr.f32.mxu1 %v3133_v0 }
 0x359   :  { %2474 = vmatpush1.bf16.msra.mxu0 %v3235_v28  ;;  %2506 = vmatpush1.bf16.msra.mxu1 %v3242_v32 }
 0x35a   :  { %2476 = vmatprep.subr.bf16.mxu0 %v3246_v36  ;;  %2508 = vmatprep.subr.bf16.mxu1 %v3248_v37 }
 0x35d   :  { %2478 = vmatpush1.bf16.msra.mxu0 %v3252_v41  ;;  %2510 = vmatpush1.bf16.msra.mxu1 %v3259_v45 }
 0x35e   :  { %2480 = vmatprep.subr.bf16.mxu0 %v3263_v49  ;;  %2512 = vmatprep.subr.bf16.mxu1 %v3267_v53 }
 0x361   :  { %2482 = vmatpush1.bf16.msra.mxu0 %v3271_v56  ;;  %2514 = vmatpush1.bf16.msra.mxu1 %v3275_v60 }
 0x362   :  { %2484 = vmatprep.subr.bf16.mxu0 %v3282_v1  ;;  %2516 = vmatprep.subr.bf16.mxu1 %v3286_v4 }
 0x365   :  { %2486 = vmatpush1.bf16.msra.mxu0 %v3290_v7  ;;  %2518 = vmatpush1.bf16.msra.mxu1 %v3294_v12 }
 0x366   :  { %2488 = vmatprep.subr.bf16.mxu0 %v3301_v17  ;;  %2520 = vmatprep.subr.bf16.mxu1 %v3305_v21 }
 0x369   :  { %2490 = vmatpush1.bf16.msra.mxu0 %v3309_v26  ;;  %2522 = vmatpush1.bf16.msra.mxu1 %v3313_v30 }
 0x36a   :  { %2492 = vmatprep.subr.bf16.mxu0 %v3320_v35  ;;  %2524 = vmatprep.subr.bf16.mxu1 %v3324_v40 }
 0x36d   :  { %2494 = vmatpush1.bf16.msra.mxu0 %v3328_v44  ;;  %2526 = vmatpush1.bf16.msra.mxu1 %v3332_v48 }
 0x36e   :  { %2496 = vmatprep.subr.bf16.mxu0 %v3339_v54  ;;  %2528 = vmatprep.subr.bf16.mxu1 %v3343_v58 }
 0x371   :  { %2498 = vmatpush1.bf16.msra.mxu0 %v3347_v59  ;;  %2530 = vmatpush1.bf16.msra.mxu1 %v3351_v61 }
 0x372   :  { %2532 = vmatprep.subr.bf16.mxu0 %v3213_v10  ;;  %2564 = vmatprep.subr.bf16.mxu1 %v3215_v11 }
 0x427   :  { %v985_v52 = vpop.f32.mrb[6].mxu0  ;;  %v1056_v62 = vpop.f32.mrb[6].mxu1 }
 0x428   :  { %v2857_v55 = vadd.f32 %v985_v52, %v3415_v14  ;;  %v987_v57 = vpop.f32.mrb[7].mxu0  ;;  %v1058_v22 = vpop.f32.mrb[7].mxu1  ;;  %v2871_v29 = vadd.f32 %v1056_v62, %v3426_v34 }
 0x429   :  { %v2858_v27 = vadd.f32 %v987_v57, %v3419_v16  ;;  %v2872_v42 = vadd.f32 %v1058_v22, %v3432_v43 }
 0x42a   :  { %v2193_v20 = vmul.f32 -1.442695, %v2857_v55  ;;  %v2195_v33 = vmul.f32 -1.442695, %v2871_v29 }
 0x42b   :  { %v2194_v25 = vmul.f32 -1.442695, %v2858_v27 }
 0x42c   :  { %2961 = vpow2.f32 %v2193_v20 }
 0x42d   :  { %2963 = vpow2.f32 %v2194_v25 }
 0x42e   :  { %2965 = vtanh.f32 %v2872_v42 }
 0x42f   :  { %2967 = vpow2.f32 %v2195_v33 }
 0x436   :  { %v2962_v38 = vpop.eup %2961 }
 0x437   :  { %v1070_v46 = vadd.f32 1.0, %v2962_v38  ;;  %v2964_v47 = vpop.eup %2963 }
 0x438   :  { %v1071_v31 = vadd.f32 1.0, %v2964_v47  ;;  %v2966_v50 = vpop.eup %2965 }
 0x439   :  { %2969 = vrcp.f32 %v1070_v46  ;;  %v2968_v51 = vpop.eup %2967 }
 0x43a   :  { %2971 = vrcp.f32 %v1071_v31  ;;  %v1072_v27 = vadd.f32 1.0, %v2968_v51 }
 0x43c   :  { %2973 = vrcp.f32 %v1072_v27 }
 0x443   :  { %v2970_v52 = vpop.eup %2969 }
 0x444   :  { %v1081_v55 = vmul.f32 %v2970_v52, %v2966_v50  ;;  %v2972_v57 = vpop.eup %2971 }
 0x445   :  { %v1080_v20 = vmul.f32 %v2972_v57, %v3519_v8 }
 0x446   :  { %v2974_v22 = vpop.eup %2973 }
 0x447   :  { %v3561_v62 = vadd.f32 %v1081_v55, %v1080_v20 }
 0x449   :  { %2975 = vtanh.f32 %v3561_v62 }
 0x453   :  { %v2976_v25 = vpop.eup %2975 }
 0x454   :  { %v1084_v29 = vmul.f32 %v2976_v25, %v2974_v22 }
 0x456   :  { %1150 = vmatmul.mubr.f32.vlgmr.msra.gmra.mrb[8].mxu0 %v1084_v29  ;;  %1221 = vmatmul.mubr.f32.vlgmr.msra.gmra.mrb[8].mxu1 %v1084_v29 }
 0x457   :  { %2534 = vmatpush1.bf16.msra.mxu0 %v3217_v15  ;;  %2566 = vmatpush1.bf16.msra.mxu1 %v3226_v19 }
 0x458   :  { %2536 = vmatprep.subr.bf16.mxu0 %v3229_v23  ;;  %2568 = vmatprep.subr.bf16.mxu1 %v3231_v24 }
 0x459   :  { %1315 = vmatprep.mubr.f32.mxu0 %v3133_v0  ;;  %1386 = vmatprep.mubr.f32.mxu1 %v3133_v0 }
 0x45b   :  { %2538 = vmatpush1.bf16.msra.mxu0 %v3235_v28  ;;  %2570 = vmatpush1.bf16.msra.mxu1 %v3242_v32 }
 0x45c   :  { %2540 = vmatprep.subr.bf16.mxu0 %v3246_v36  ;;  %2572 = vmatprep.subr.bf16.mxu1 %v3248_v37 }
 0x45f   :  { %2542 = vmatpush1.bf16.msra.mxu0 %v3252_v41  ;;  %2574 = vmatpush1.bf16.msra.mxu1 %v3259_v45 }
 0x460   :  { %2544 = vmatprep.subr.bf16.mxu0 %v3263_v49  ;;  %2576 = vmatprep.subr.bf16.mxu1 %v3267_v53 }
 0x463   :  { %2546 = vmatpush1.bf16.msra.mxu0 %v3271_v56  ;;  %2578 = vmatpush1.bf16.msra.mxu1 %v3275_v60 }
 0x464   :  { %2548 = vmatprep.subr.bf16.mxu0 %v3282_v1  ;;  %2580 = vmatprep.subr.bf16.mxu1 %v3286_v4 }
 0x467   :  { %2550 = vmatpush1.bf16.msra.mxu0 %v3290_v7  ;;  %2582 = vmatpush1.bf16.msra.mxu1 %v3294_v12 }
 0x468   :  { %2552 = vmatprep.subr.bf16.mxu0 %v3301_v17  ;;  %2584 = vmatprep.subr.bf16.mxu1 %v3305_v21 }
 0x46b   :  { %2554 = vmatpush1.bf16.msra.mxu0 %v3309_v26  ;;  %2586 = vmatpush1.bf16.msra.mxu1 %v3313_v30 }
 0x46c   :  { %2556 = vmatprep.subr.bf16.mxu0 %v3320_v35  ;;  %2588 = vmatprep.subr.bf16.mxu1 %v3324_v40 }
 0x46f   :  { %2558 = vmatpush1.bf16.msra.mxu0 %v3328_v44  ;;  %2590 = vmatpush1.bf16.msra.mxu1 %v3332_v48 }
 0x470   :  { %2560 = vmatprep.subr.bf16.mxu0 %v3339_v54  ;;  %2592 = vmatprep.subr.bf16.mxu1 %v3343_v58 }
 0x473   :  { %2562 = vmatpush1.bf16.msra.mxu0 %v3347_v59  ;;  %2594 = vmatpush1.bf16.msra.mxu1 %v3351_v61 }
 0x474   :  { %2596 = vmatprep.subr.bf16.mxu0 %v3213_v10  ;;  %2628 = vmatprep.subr.bf16.mxu1 %v3215_v11 }
 0x529   :  { %v1151_v8 = vpop.f32.mrb[8].mxu0  ;;  %v1222_v42 = vpop.f32.mrb[8].mxu1 }
 0x52a   :  { %v2859_v33 = vadd.f32 %v1151_v8, %v3415_v14  ;;  %v1153_v38 = vpop.f32.mrb[9].mxu0  ;;  %v1224_v46 = vpop.f32.mrb[9].mxu1  ;;  %v2873_v51 = vadd.f32 %v1222_v42, %v3426_v34 }
 0x52b   :  { %v2860_v47 = vadd.f32 %v1153_v38, %v3419_v16  ;;  %v2874_v52 = vadd.f32 %v1224_v46, %v3432_v43 }
 0x52c   :  { %v2196_v31 = vmul.f32 -1.442695, %v2859_v33  ;;  %v2198_v55 = vmul.f32 -1.442695, %v2873_v51 }
 0x52d   :  { %v2197_v50 = vmul.f32 -1.442695, %v2860_v47 }
 0x52e   :  { %2977 = vpow2.f32 %v2196_v31 }
 0x52f   :  { %2979 = vpow2.f32 %v2197_v50 }
 0x530   :  { %2981 = vtanh.f32 %v2874_v52 }
 0x531   :  { %2983 = vpow2.f32 %v2198_v55 }
 0x538   :  { %v2978_v57 = vpop.eup %2977 }
 0x539   :  { %v1236_v27 = vadd.f32 1.0, %v2978_v57  ;;  %v2980_v20 = vpop.eup %2979 }
 0x53a   :  { %v1237_v22 = vadd.f32 1.0, %v2980_v20  ;;  %v2982_v25 = vpop.eup %2981 }
 0x53b   :  { %2985 = vrcp.f32 %v1236_v27  ;;  %v2984_v29 = vpop.eup %2983 }
 0x53c   :  { %2987 = vrcp.f32 %v1237_v22  ;;  %v1238_v47 = vadd.f32 1.0, %v2984_v29 }
 0x53e   :  { %2989 = vrcp.f32 %v1238_v47 }
 0x545   :  { %v2986_v8 = vpop.eup %2985 }
 0x546   :  { %v1247_v33 = vmul.f32 %v2986_v8, %v2982_v25  ;;  %v2988_v38 = vpop.eup %2987 }
 0x547   :  { %v1246_v31 = vmul.f32 %v2988_v38, %v3561_v62 }
 0x548   :  { %v2990_v46 = vpop.eup %2989 }
 0x549   :  { %v3603_v42 = vadd.f32 %v1247_v33, %v1246_v31 }
 0x54b   :  { %2991 = vtanh.f32 %v3603_v42 }
 0x555   :  { %v2992_v50 = vpop.eup %2991 }
 0x556   :  { %v1250_v51 = vmul.f32 %v2992_v50, %v2990_v46 }
 0x558   :  { %1316 = vmatmul.mubr.f32.vlgmr.msra.gmra.mrb[10].mxu0 %v1250_v51  ;;  %1387 = vmatmul.mubr.f32.vlgmr.msra.gmra.mrb[10].mxu1 %v1250_v51 }
 0x559   :  { %2598 = vmatpush1.bf16.msra.mxu0 %v3217_v15  ;;  %2630 = vmatpush1.bf16.msra.mxu1 %v3226_v19 }
 0x55a   :  { %2600 = vmatprep.subr.bf16.mxu0 %v3229_v23  ;;  %2632 = vmatprep.subr.bf16.mxu1 %v3231_v24 }
 0x55b   :  { %1481 = vmatprep.mubr.f32.mxu0 %v3133_v0  ;;  %1552 = vmatprep.mubr.f32.mxu1 %v3133_v0 }
 0x55d   :  { %2602 = vmatpush1.bf16.msra.mxu0 %v3235_v28  ;;  %2634 = vmatpush1.bf16.msra.mxu1 %v3242_v32 }
 0x55e   :  { %2604 = vmatprep.subr.bf16.mxu0 %v3246_v36  ;;  %2636 = vmatprep.subr.bf16.mxu1 %v3248_v37 }
 0x561   :  { %2606 = vmatpush1.bf16.msra.mxu0 %v3252_v41  ;;  %2638 = vmatpush1.bf16.msra.mxu1 %v3259_v45 }
 0x562   :  { %2608 = vmatprep.subr.bf16.mxu0 %v3263_v49  ;;  %2640 = vmatprep.subr.bf16.mxu1 %v3267_v53 }
 0x565   :  { %2610 = vmatpush1.bf16.msra.mxu0 %v3271_v56  ;;  %2642 = vmatpush1.bf16.msra.mxu1 %v3275_v60 }
 0x566   :  { %2612 = vmatprep.subr.bf16.mxu0 %v3282_v1  ;;  %2644 = vmatprep.subr.bf16.mxu1 %v3286_v4 }
 0x569   :  { %2614 = vmatpush1.bf16.msra.mxu0 %v3290_v7  ;;  %2646 = vmatpush1.bf16.msra.mxu1 %v3294_v12 }
 0x56a   :  { %2616 = vmatprep.subr.bf16.mxu0 %v3301_v17  ;;  %2648 = vmatprep.subr.bf16.mxu1 %v3305_v21 }
 0x56d   :  { %2618 = vmatpush1.bf16.msra.mxu0 %v3309_v26  ;;  %2650 = vmatpush1.bf16.msra.mxu1 %v3313_v30 }
 0x56e   :  { %2620 = vmatprep.subr.bf16.mxu0 %v3320_v35  ;;  %2652 = vmatprep.subr.bf16.mxu1 %v3324_v40 }
 0x571   :  { %2622 = vmatpush1.bf16.msra.mxu0 %v3328_v44  ;;  %2654 = vmatpush1.bf16.msra.mxu1 %v3332_v48 }
 0x572   :  { %2624 = vmatprep.subr.bf16.mxu0 %v3339_v54  ;;  %2656 = vmatprep.subr.bf16.mxu1 %v3343_v58 }
 0x575   :  { %2626 = vmatpush1.bf16.msra.mxu0 %v3347_v59  ;;  %2658 = vmatpush1.bf16.msra.mxu1 %v3351_v61 }
 0x576   :  { %2660 = vmatprep.subr.bf16.mxu0 %v3213_v10  ;;  %2692 = vmatprep.subr.bf16.mxu1 %v3215_v11 }
 0x62b   :  { %v1317_v62 = vpop.f32.mrb[10].mxu0  ;;  %v1388_v52 = vpop.f32.mrb[10].mxu1 }
 0x62c   :  { %v2861_v55 = vadd.f32 %v1317_v62, %v3415_v14  ;;  %v1319_v57 = vpop.f32.mrb[11].mxu0  ;;  %v1390_v27 = vpop.f32.mrb[11].mxu1  ;;  %v2875_v29 = vadd.f32 %v1388_v52, %v3426_v34 }
 0x62d   :  { %v2862_v20 = vadd.f32 %v1319_v57, %v3419_v16  ;;  %v2876_v8 = vadd.f32 %v1390_v27, %v3432_v43 }
 0x62e   :  { %v2199_v22 = vmul.f32 -1.442695, %v2861_v55  ;;  %v2201_v33 = vmul.f32 -1.442695, %v2875_v29 }
 0x62f   :  { %v2200_v25 = vmul.f32 -1.442695, %v2862_v20 }
 0x630   :  { %2993 = vpow2.f32 %v2199_v22 }
 0x631   :  { %2995 = vpow2.f32 %v2200_v25 }
 0x632   :  { %2997 = vtanh.f32 %v2876_v8 }
 0x633   :  { %2999 = vpow2.f32 %v2201_v33 }
 0x63a   :  { %v2994_v38 = vpop.eup %2993 }
 0x63b   :  { %v1402_v47 = vadd.f32 1.0, %v2994_v38  ;;  %v2996_v31 = vpop.eup %2995 }
 0x63c   :  { %v1403_v46 = vadd.f32 1.0, %v2996_v31  ;;  %v2998_v50 = vpop.eup %2997 }
 0x63d   :  { %3001 = vrcp.f32 %v1402_v47  ;;  %v3000_v51 = vpop.eup %2999 }
 0x63e   :  { %3003 = vrcp.f32 %v1403_v46  ;;  %v1404_v20 = vadd.f32 1.0, %v3000_v51 }
 0x640   :  { %3005 = vrcp.f32 %v1404_v20 }
 0x647   :  { %v3002_v62 = vpop.eup %3001 }
 0x648   :  { %v1413_v55 = vmul.f32 %v3002_v62, %v2998_v50  ;;  %v3004_v57 = vpop.eup %3003 }
 0x649   :  { %v1412_v22 = vmul.f32 %v3004_v57, %v3603_v42 }
 0x64a   :  { %v3006_v27 = vpop.eup %3005 }
 0x64b   :  { %v3645_v52 = vadd.f32 %v1413_v55, %v1412_v22 }
 0x64d   :  { %3007 = vtanh.f32 %v3645_v52 }
 0x657   :  { %v3008_v25 = vpop.eup %3007 }
 0x658   :  { %v1416_v29 = vmul.f32 %v3008_v25, %v3006_v27 }
 0x65a   :  { %1482 = vmatmul.mubr.f32.vlgmr.msra.gmra.mrb[12].mxu0 %v1416_v29  ;;  %1553 = vmatmul.mubr.f32.vlgmr.msra.gmra.mrb[12].mxu1 %v1416_v29 }
 0x65b   :  { %2662 = vmatpush1.bf16.msra.mxu0 %v3217_v15  ;;  %2694 = vmatpush1.bf16.msra.mxu1 %v3226_v19 }
 0x65c   :  { %2664 = vmatprep.subr.bf16.mxu0 %v3229_v23  ;;  %2696 = vmatprep.subr.bf16.mxu1 %v3231_v24 }
 0x65d   :  { %1647 = vmatprep.mubr.f32.mxu0 %v3133_v0  ;;  %1718 = vmatprep.mubr.f32.mxu1 %v3133_v0 }
 0x65f   :  { %2666 = vmatpush1.bf16.msra.mxu0 %v3235_v28  ;;  %2698 = vmatpush1.bf16.msra.mxu1 %v3242_v32 }
 0x660   :  { %2668 = vmatprep.subr.bf16.mxu0 %v3246_v36  ;;  %2700 = vmatprep.subr.bf16.mxu1 %v3248_v37 }
 0x663   :  { %2670 = vmatpush1.bf16.msra.mxu0 %v3252_v41  ;;  %2702 = vmatpush1.bf16.msra.mxu1 %v3259_v45 }
 0x664   :  { %2672 = vmatprep.subr.bf16.mxu0 %v3263_v49  ;;  %2704 = vmatprep.subr.bf16.mxu1 %v3267_v53 }
 0x667   :  { %2674 = vmatpush1.bf16.msra.mxu0 %v3271_v56  ;;  %2706 = vmatpush1.bf16.msra.mxu1 %v3275_v60 }
 0x668   :  { %2676 = vmatprep.subr.bf16.mxu0 %v3282_v1  ;;  %2708 = vmatprep.subr.bf16.mxu1 %v3286_v4 }
 0x66b   :  { %2678 = vmatpush1.bf16.msra.mxu0 %v3290_v7  ;;  %2710 = vmatpush1.bf16.msra.mxu1 %v3294_v12 }
 0x66c   :  { %2680 = vmatprep.subr.bf16.mxu0 %v3301_v17  ;;  %2712 = vmatprep.subr.bf16.mxu1 %v3305_v21 }
 0x66f   :  { %2682 = vmatpush1.bf16.msra.mxu0 %v3309_v26  ;;  %2714 = vmatpush1.bf16.msra.mxu1 %v3313_v30 }
 0x670   :  { %2684 = vmatprep.subr.bf16.mxu0 %v3320_v35  ;;  %2716 = vmatprep.subr.bf16.mxu1 %v3324_v40 }
 0x673   :  { %2686 = vmatpush1.bf16.msra.mxu0 %v3328_v44  ;;  %2718 = vmatpush1.bf16.msra.mxu1 %v3332_v48 }
 0x674   :  { %2688 = vmatprep.subr.bf16.mxu0 %v3339_v54  ;;  %2720 = vmatprep.subr.bf16.mxu1 %v3343_v58 }
 0x677   :  { %2690 = vmatpush1.bf16.msra.mxu0 %v3347_v59  ;;  %2722 = vmatpush1.bf16.msra.mxu1 %v3351_v61 }
 0x678   :  { %2724 = vmatprep.subr.bf16.mxu0 %v3213_v10  ;;  %2756 = vmatprep.subr.bf16.mxu1 %v3215_v11 }
 0x72d   :  { %v1483_v42 = vpop.f32.mrb[12].mxu0  ;;  %v1554_v8 = vpop.f32.mrb[12].mxu1 }
 0x72e   :  { %v2863_v33 = vadd.f32 %v1483_v42, %v3415_v14  ;;  %v1485_v38 = vpop.f32.mrb[13].mxu0  ;;  %v1556_v47 = vpop.f32.mrb[13].mxu1  ;;  %v2877_v51 = vadd.f32 %v1554_v8, %v3426_v34 }
 0x72f   :  { %v2864_v31 = vadd.f32 %v1485_v38, %v3419_v16  ;;  %v2878_v62 = vadd.f32 %v1556_v47, %v3432_v43 }
 0x730   :  { %v2202_v46 = vmul.f32 -1.442695, %v2863_v33  ;;  %v2204_v55 = vmul.f32 -1.442695, %v2877_v51  ;;  %v1921_v51 = vld [vmem:[#allocation5 + $0x30] sm:$0xff] }
 0x731   :  { %v2203_v50 = vmul.f32 -1.442695, %v2864_v31 }
 0x732   :  { %3009 = vpow2.f32 %v2202_v46 }
 0x733   :  { %3011 = vpow2.f32 %v2203_v50  ;;  %v1917_v50 = vld [vmem:[#allocation5 + $0x10] sm:$0xff] }
 0x734   :  { %3013 = vtanh.f32 %v2878_v62  ;;  %v2821_v62 = vpack.c.bf16 %v1921_v51, %v1917_v50  ;;  %v1962_v51 = vld [vmem:[#allocation5 + $0x178] sm:$0xff] }
 0x735   :  { %3015 = vpow2.f32 %v2204_v55  ;;  %v1924_v55 = vld [vmem:[#allocation5 + $0x48] sm:$0xff] }
 0x73c   :  { %v3010_v10 = vpop.eup %3009 }
 0x73d   :  { %v1568_v57 = vadd.f32 1.0, %v3010_v10  ;;  %v3012_v11 = vpop.eup %3011  ;;  %v1928_v10 = vld [vmem:[#allocation5 + $0x68] sm:$0xff] }
 0x73e   :  { %v1569_v20 = vadd.f32 1.0, %v3012_v11  ;;  %v3014_v22 = vpop.eup %3013  ;;  %v1930_v11 = vld [vmem:[#allocation5 + $0x78] sm:$0xff] }
 0x73f   :  { %3017 = vrcp.f32 %v1568_v57  ;;  %v3016_v27 = vpop.eup %3015  ;;  %v1926_v57 = vld [vmem:[#allocation5 + $0x58] sm:$0xff] }
 0x740   :  { %3019 = vrcp.f32 %v1569_v20  ;;  %v1570_v33 = vadd.f32 1.0, %v3016_v27  ;;  %v1923_v20 = vld [vmem:[#allocation5 + $0x40] sm:$0xff]  ;;  %v2823_v27 = vpack.c.bf16 %v1930_v11, %v1926_v57  ;;  %v1961_v11 = vld [vmem:[#allocation5 + $0x170] sm:$0xff] }
 0x742   :  { %3021 = vrcp.f32 %v1570_v33 }
 0x749   :  { %v3018_v25 = vpop.eup %3017 }
 0x74a   :  { %v1579_v29 = vmul.f32 %v3018_v25, %v3014_v22  ;;  %v3020_v42 = vpop.eup %3019  ;;  %v1927_v22 = vld [vmem:[#allocation5 + $0x60] sm:$0xff] }
 0x74b   :  { %v1578_v38 = vmul.f32 %v3020_v42, %v3645_v52  ;;  %v2793_v25 = vpack.c.bf16 %v1927_v22, %v1923_v20  ;;  %v1929_v42 = vld [vmem:[#allocation5 + $0x70] sm:$0xff]  ;;  %v1964_v20 = vld [vmem:[#allocation5 + $0x188] sm:$0xff] }
 0x74c   :  { %v3022_v47 = vpop.eup %3021 }
 0x74d   :  { %v3687_v8 = vadd.f32 %v1579_v29, %v1578_v38  ;;  %v1925_v29 = vld [vmem:[#allocation5 + $0x50] sm:$0xff]  ;;  %v1932_v38 = vld [vmem:[#allocation5 + $0x88] sm:$0xff] }
 0x74e   :  { %v2825_v33 = vpack.c.bf16 %v1929_v42, %v1925_v29  ;;  %v1970_v29 = vld [vmem:[#allocation5 + $0x1b8] sm:$0xff] }
 0x74f   :  { %3023 = vtanh.f32 %v3687_v8 }
 0x759   :  { %v3024_v31 = vpop.eup %3023 }
 0x75a   :  { %v1582_v46 = vmul.f32 %v3024_v31, %v3022_v47  ;;  %v1934_v47 = vld [vmem:[#allocation5 + $0x98] sm:$0xff] }
 0x75c   :  { %1648 = vmatmul.mubr.f32.vlgmr.msra.gmra.mrb[16].mxu0 %v1582_v46  ;;  %1719 = vmatmul.mubr.f32.vlgmr.msra.gmra.mrb[16].mxu1 %v1582_v46  ;;  %v1938_v46 = vld [vmem:[#allocation5 + $0xb8] sm:$0xff] }
 0x75d   :  { %2726 = vmatpush1.bf16.msra.mxu0 %v3217_v15  ;;  %2758 = vmatpush1.bf16.msra.mxu1 %v3226_v19  ;;  %v3724_v15 = vadd.f32 %v3400_v2, %v3415_v14  ;;  %v3728_v19 = vadd.f32 %v3403_v5, %v3419_v16  ;;  %v1916_v2 = vld [vmem:[#allocation5 + $0x8] sm:$0xff]  ;;  %v1922_v14 = vld [vmem:[#allocation5 + $0x38] sm:$0xff]  ;;  %v1915_v16 = vld [vmem:[#allocation5] sm:$0xff] }
 0x75e   :  { %2728 = vmatprep.subr.bf16.mxu0 %v3229_v23  ;;  %2760 = vmatprep.subr.bf16.mxu1 %v3231_v24  ;;  %v1920_v5 = vld [vmem:[#allocation5 + $0x28] sm:$0xff] }
 0x75f   :  { %1813 = vmatprep.mubr.f32.mxu0 %v3133_v0  ;;  %1884 = vmatprep.mubr.f32.mxu1 %v3133_v0 }
 0x761   :  { %2730 = vmatpush1.bf16.msra.mxu0 %v3235_v28  ;;  %2762 = vmatpush1.bf16.msra.mxu1 %v3242_v32 }
 0x762   :  { %2732 = vmatprep.subr.bf16.mxu0 %v3246_v36  ;;  %2764 = vmatprep.subr.bf16.mxu1 %v3248_v37 }
 0x765   :  { %2734 = vmatpush1.bf16.msra.mxu0 %v3252_v41  ;;  %2766 = vmatpush1.bf16.msra.mxu1 %v3259_v45 }
 0x766   :  { %2736 = vmatprep.subr.bf16.mxu0 %v3263_v49  ;;  %2768 = vmatprep.subr.bf16.mxu1 %v3267_v53  ;;  %v3734_v49 = vadd.f32 %v3405_v6, %v3426_v34  ;;  %v1918_v6 = vld [vmem:[#allocation5 + $0x18] sm:$0xff]  ;;  %v1919_v34 = vld [vmem:[#allocation5 + $0x20] sm:$0xff] }
 0x767   :  { %v2789_v52 = vpack.c.bf16 %v1919_v34, %v1915_v16  ;;  %v1956_v34 = vld [vmem:[#allocation5 + $0x148] sm:$0xff] }
 0x769   :  { %2738 = vmatpush1.bf16.msra.mxu0 %v3271_v56  ;;  %2770 = vmatpush1.bf16.msra.mxu1 %v3275_v60  ;;  %v3739_v56 = vadd.f32 %v3411_v13, %v3432_v43  ;;  %v2787_v13 = vpack.c.bf16 %v1920_v5, %v1916_v2  ;;  %v2819_v43 = vpack.c.bf16 %v1922_v14, %v1918_v6  ;;  %v1951_v2 = vld [vmem:[#allocation5 + $0x120] sm:$0xff]  ;;  %v1953_v14 = vld [vmem:[#allocation5 + $0x130] sm:$0xff] }
 0x76a   :  { %2740 = vmatprep.subr.bf16.mxu0 %v3282_v1  ;;  %2772 = vmatprep.subr.bf16.mxu1 %v3286_v4 }
 0x76d   :  { %2742 = vmatpush1.bf16.msra.mxu0 %v3290_v7  ;;  %2774 = vmatpush1.bf16.msra.mxu1 %v3294_v12 }
 0x76e   :  { %2744 = vmatprep.subr.bf16.mxu0 %v3301_v17  ;;  %2776 = vmatprep.subr.bf16.mxu1 %v3305_v21 }
 0x771   :  { %2746 = vmatpush1.bf16.msra.mxu0 %v3309_v26  ;;  %2778 = vmatpush1.bf16.msra.mxu1 %v3313_v30 }
 0x772   :  { %2748 = vmatprep.subr.bf16.mxu0 %v3320_v35  ;;  %2780 = vmatprep.subr.bf16.mxu1 %v3324_v40 }
 0x775   :  { %2750 = vmatpush1.bf16.msra.mxu0 %v3328_v44  ;;  %2782 = vmatpush1.bf16.msra.mxu1 %v3332_v48 }
 0x776   :  { %2752 = vmatprep.subr.bf16.mxu0 %v3339_v54  ;;  %2784 = vmatprep.subr.bf16.mxu1 %v3343_v58 }
 0x779   :  { %2754 = vmatpush1.bf16.msra.mxu0 %v3347_v59  ;;  %2786 = vmatpush1.bf16.msra.mxu1 %v3351_v61 }
 0x77a   :  { %2788 = vmatprep.subr.bf16.mxu0 %v2787_v13  ;;  %2820 = vmatprep.subr.bf16.mxu1 %v2819_v43  ;;  %v1949_v13 = vld [vmem:[#allocation5 + $0x110] sm:$0xff]  ;;  %v1960_v43 = vld [vmem:[#allocation5 + $0x168] sm:$0xff] }
 0x77b   :  { %v2837_v16 = vpack.c.bf16 %v1953_v14, %v1949_v13  ;;  %v2807_v50 = vpack.c.bf16 %v1960_v43, %v1956_v34 }
 0x82f   :  { %v1649_v23 = vpop.f32.mrb[16].mxu0  ;;  %v1720_v24 = vpop.f32.mrb[16].mxu1 }
 0x830   :  { %v1650_v28 = vadd.f32 %v1649_v23, %v3724_v15  ;;  %v1651_v32 = vpop.f32.mrb[17].mxu0  ;;  %v1722_v36 = vpop.f32.mrb[17].mxu1  ;;  %v1721_v53 = vadd.f32 %v1720_v24, %v3734_v49  ;;  %v1931_v23 = vld [vmem:[#allocation5 + $0x80] sm:$0xff] }
 0x831   :  { %v1652_v37 = vadd.f32 %v1651_v32, %v3728_v19  ;;  %v1723_v60 = vadd.f32 %v1722_v36, %v3739_v56  ;;  %v1935_v24 = vld [vmem:[#allocation5 + $0xa0] sm:$0xff]  ;;  %v1933_v36 = vld [vmem:[#allocation5 + $0x90] sm:$0xff] }
 0x832   :  { %v2205_v41 = vmul.f32 -1.442695, %v1650_v28  ;;  %v2207_v1 = vmul.f32 -1.442695, %v1721_v53  ;;  %v2827_v28 = vpack.c.bf16 %v1938_v46, %v1934_v47  ;;  %v2797_v32 = vpack.c.bf16 %v1935_v24, %v1931_v23  ;;  %v1944_v53 = vld [vmem:[#allocation5 + $0xe8] sm:$0xff]  ;;  %v1965_v47 = vld [vmem:[#allocation5 + $0x190] sm:$0xff] }
 0x833   :  { %v2206_v45 = vmul.f32 -1.442695, %v1652_v37  ;;  %v1937_v37 = vld [vmem:[#allocation5 + $0xb0] sm:$0xff]  ;;  %v1972_v23 = vld [vmem:[#allocation5 + $0x1c8] sm:$0xff] }
 0x834   :  { %3025 = vpow2.f32 %v2205_v41  ;;  %v2829_v41 = vpack.c.bf16 %v1937_v37, %v1933_v36  ;;  %v1969_v46 = vld [vmem:[#allocation5 + $0x1b0] sm:$0xff]  ;;  %v1976_v24 = vld [vmem:[#allocation5 + $0x1e8] sm:$0xff]  ;;  %v1974_v36 = vld [vmem:[#allocation5 + $0x1d8] sm:$0xff] }
 0x835   :  { %3027 = vpow2.f32 %v2206_v45  ;;  %v1940_v45 = vld [vmem:[#allocation5 + $0xc8] sm:$0xff]  ;;  %v1978_v37 = vld [vmem:[#allocation5 + $0x1f8] sm:$0xff] }
 0x836   :  { %3029 = vtanh.f32 %v1723_v60  ;;  %v1942_v60 = vld [vmem:[#allocation5 + $0xd8] sm:$0xff] }
 0x837   :  { %3031 = vpow2.f32 %v2207_v1  ;;  %v2799_v1 = vpack.c.bf16 %v1944_v53, %v1940_v45  ;;  %v2847_v45 = vpack.c.bf16 %v1978_v37, %v1974_v36  ;;  %v1975_v53 = vld [vmem:[#allocation5 + $0x1e0] sm:$0xff] }
 0x83e   :  { %v3026_v4 = vpop.eup %3025 }
 0x83f   :  { %v1734_v7 = vadd.f32 1.0, %v3026_v4  ;;  %v3028_v12 = vpop.eup %3027  ;;  %v1946_v4 = vld [vmem:[#allocation5 + $0xf8] sm:$0xff] }
 0x840   :  { %v1735_v17 = vadd.f32 1.0, %v3028_v12  ;;  %v3030_v21 = vpop.eup %3029  ;;  %v1943_v12 = vld [vmem:[#allocation5 + $0xe0] sm:$0xff] }
 0x841   :  { %3033 = vrcp.f32 %v1734_v7  ;;  %v3032_v26 = vpop.eup %3031  ;;  %v1939_v7 = vld [vmem:[#allocation5 + $0xc0] sm:$0xff] }
 0x842   :  { %3035 = vrcp.f32 %v1735_v17  ;;  %v1736_v44 = vadd.f32 1.0, %v3032_v26  ;;  %v2831_v17 = vpack.c.bf16 %v1946_v4, %v1942_v60  ;;  %v1941_v26 = vld [vmem:[#allocation5 + $0xd0] sm:$0xff] }
 0x843   :  { %v1973_v60 = vld [vmem:[#allocation5 + $0x1d0] sm:$0xff] }
 0x844   :  { %3037 = vrcp.f32 %v1736_v44  ;;  %v1952_v44 = vld [vmem:[#allocation5 + $0x128] sm:$0xff] }
 0x84b   :  { %v3034_v30 = vpop.eup %3033 }
 0x84c   :  { %v1745_v35 = vmul.f32 %v3034_v30, %v3030_v21  ;;  %v3036_v40 = vpop.eup %3035  ;;  %v2801_v21 = vpack.c.bf16 %v1943_v12, %v1939_v7  ;;  %v1945_v30 = vld [vmem:[#allocation5 + $0xf0] sm:$0xff] }
 0x84d   :  { %v1744_v48 = vmul.f32 %v3036_v40, %v3687_v8  ;;  %v1936_v8 = vld [vmem:[#allocation5 + $0xa8] sm:$0xff] }
 0x84e   :  { %v3038_v58 = vpop.eup %3037  ;;  %v2795_v31 = vpack.c.bf16 %v1936_v8, %v1932_v38  ;;  %v1948_v40 = vld [vmem:[#allocation5 + $0x108] sm:$0xff]  ;;  %v1963_v38 = vld [vmem:[#allocation5 + $0x180] sm:$0xff] }
 0x84f   :  { %v3743_v54 = vadd.f32 %v1745_v35, %v1744_v48  ;;  %v2833_v35 = vpack.c.bf16 %v1945_v30, %v1941_v26  ;;  %v1950_v48 = vld [vmem:[#allocation5 + $0x118] sm:$0xff]  ;;  %v1967_v8 = vld [vmem:[#allocation5 + $0x1a0] sm:$0xff] }
 0x851   :  { %3039 = vtanh.f32 %v3743_v54 }
 0x85b   :  { %v3040_v59 = vpop.eup %3039 }
 0x85c   :  { %v1748_v61 = vmul.f32 %v3040_v59, %v3038_v58  ;;  %v2803_v58 = vpack.c.bf16 %v1952_v44, %v1948_v40  ;;  %v1954_v59 = vld [vmem:[#allocation5 + $0x138] sm:$0xff] }
 0x85d   :  { %v2835_v5 = vpack.c.bf16 %v1954_v59, %v1950_v48 }
 0x85e   :  { %1814 = vmatmul.mubr.f32.vlgmr.msra.gmra.mrb[18].mxu0 %v1748_v61  ;;  %1885 = vmatmul.mubr.f32.vlgmr.msra.gmra.mrb[18].mxu1 %v1748_v61  ;;  %v1947_v61 = vld [vmem:[#allocation5 + $0x100] sm:$0xff] }
 0x85f   :  { %2065 = vmatprep.mubr.f32.mxu0 %v3133_v0  ;;  %2136 = vmatprep.mubr.f32.mxu1 %v3133_v0  ;;  %v2791_v0 = vpack.c.bf16 %v1928_v10, %v1924_v55  ;;  %v2805_v6 = vpack.c.bf16 %v1951_v2, %v1947_v61  ;;  %v1959_v55 = vld [vmem:[#allocation5 + $0x160] sm:$0xff] }
 0x860   :  { %2790 = vmatpush1.bf16.msra.mxu0 %v2789_v52  ;;  %2822 = vmatpush1.bf16.msra.mxu1 %v2821_v62  ;;  %v1958_v52 = vld [vmem:[#allocation5 + $0x158] sm:$0xff]  ;;  %v1955_v62 = vld [vmem:[#allocation5 + $0x140] sm:$0xff] }
 0x861   :  { %2792 = vmatprep.subr.bf16.mxu0 %v2791_v0  ;;  %2824 = vmatprep.subr.bf16.mxu1 %v2823_v27  ;;  %v2839_v10 = vpack.c.bf16 %v1962_v51, %v1958_v52  ;;  %v2809_v57 = vpack.c.bf16 %v1959_v55, %v1955_v62  ;;  %v1957_v0 = vld [vmem:[#allocation5 + $0x150] sm:$0xff]  ;;  %v1968_v27 = vld [vmem:[#allocation5 + $0x1a8] sm:$0xff]  ;;  %v1979_v51 = vld [vmem:[%s3781_s5] sm:$0xf]  ;;  %s3101_s5 = scalar_lea.vmem %s2154_s22, 512 }
 0x862   :  { %v2841_v22 = vpack.c.bf16 %v1961_v11, %v1957_v0  ;;  %v2811_v42 = vpack.c.bf16 %v1968_v27, %v1964_v20  ;;  %v1984_v62 = vrot.slane %v1979_v51, %v68_v3  ;;  %v1992_v55 = vrot.slane %v1979_v51, %v76_v18  ;;  %p3102_p2 = scmp.ne.s32.totalorder %s2154_s22, %s3101_s5  ;;  %p3107_p4 = scmp.lt.s32.totalorder %s3101_s5, %s3101_s5 }
 0x864   :  { %2794 = vmatpush1.bf16.msra.mxu0 %v2793_v25  ;;  %2826 = vmatpush1.bf16.msra.mxu1 %v2825_v33  ;;  %v1966_v25 = vld [vmem:[#allocation5 + $0x198] sm:$0xff]  ;;  %p3108_p5 = por %p3107_p4, %p3106_p3 }
 0x865   :  { %2796 = vmatprep.subr.bf16.mxu0 %v2795_v31  ;;  %2828 = vmatprep.subr.bf16.mxu1 %v2827_v28  ;;  %v2843_v33 = vpack.c.bf16 %v1970_v29, %v1966_v25  ;;  %v2813_v31 = vpack.c.bf16 %v1967_v8, %v1963_v38  ;;  %v2845_v28 = vpack.c.bf16 %v1969_v46, %v1965_v47 }
 0x866   :  { %p3109_p6 = pnand %p3108_p5, %p3102_p2 }
 0x868   :  { %2798 = vmatpush1.bf16.msra.mxu0 %v2797_v32  ;;  %2830 = vmatpush1.bf16.msra.mxu1 %v2829_v41  ;;  %v2815_v32 = vpack.c.bf16 %v1976_v24, %v1972_v23  ;;  %v1971_v41 = vld [vmem:[#allocation5 + $0x1c0] sm:$0xff] }
 0x869   :  { %2800 = vmatprep.subr.bf16.mxu0 %v2799_v1  ;;  %2832 = vmatprep.subr.bf16.mxu1 %v2831_v17  ;;  %v1977_v1 = vld [vmem:[#allocation5 + $0x1f0] sm:$0xff]  ;;  %v2817_v4 = vpack.c.bf16 %v1975_v53, %v1971_v41 }
 0x86a   :  { %v2849_v7 = vpack.c.bf16 %v1977_v1, %v1973_v60 }
 0x86c   :  { %2802 = vmatpush1.bf16.msra.mxu0 %v2801_v21  ;;  %2834 = vmatpush1.bf16.msra.mxu1 %v2833_v35 }
 0x86d   :  { %2804 = vmatprep.subr.bf16.mxu0 %v2803_v58  ;;  %2836 = vmatprep.subr.bf16.mxu1 %v2835_v5 }
 0x870   :  { %2806 = vmatpush1.bf16.msra.mxu0 %v2805_v6  ;;  %2838 = vmatpush1.bf16.msra.mxu1 %v2837_v16 }
 0x871   :  { %2808 = vmatprep.subr.bf16.mxu0 %v2807_v50  ;;  %2840 = vmatprep.subr.bf16.mxu1 %v2839_v10  ;;  %v1996_v10 = vrot.slane %v1979_v51, %v80_v39 }
 0x874   :  { %2810 = vmatpush1.bf16.msra.mxu0 %v2809_v57  ;;  %2842 = vmatpush1.bf16.msra.mxu1 %v2841_v22 }
 0x875   :  { %2812 = vmatprep.subr.bf16.mxu0 %v2811_v42  ;;  %2844 = vmatprep.subr.bf16.mxu1 %v2843_v33 }
 0x878   :  { %2814 = vmatpush1.bf16.msra.mxu0 %v2813_v31  ;;  %2846 = vmatpush1.bf16.msra.mxu1 %v2845_v28 }
 0x879   :  { %2816 = vmatprep.subr.bf16.mxu0 %v2815_v32  ;;  %2848 = vmatprep.subr.bf16.mxu1 %v2847_v45 }
 0x87c   :  { %2818 = vmatpush1.bf16.msra.mxu0 %v2817_v4  ;;  %2850 = vmatpush1.bf16.msra.mxu1 %v2849_v7 }
 0x931   :  { %v1815_v12 = vpop.f32.mrb[18].mxu0  ;;  %v1886_v17 = vpop.f32.mrb[18].mxu1 }
 0x932   :  { %v1816_v21 = vadd.f32 %v1815_v12, %v3724_v15  ;;  %v1817_v26 = vpop.f32.mrb[19].mxu0  ;;  %v1888_v30 = vpop.f32.mrb[19].mxu1  ;;  %v1887_v48 = vadd.f32 %v1886_v17, %v3734_v49 }
 0x933   :  { %v1818_v35 = vadd.f32 %v1817_v26, %v3728_v19  ;;  %v1889_v58 = vadd.f32 %v1888_v30, %v3739_v56 }
 0x934   :  { %v2208_v40 = vmul.f32 -1.442695, %v1816_v21  ;;  %v2210_v59 = vmul.f32 -1.442695, %v1887_v48 }
 0x935   :  { %v2209_v44 = vmul.f32 -1.442695, %v1818_v35 }
 0x936   :  { %3041 = vpow2.f32 %v2208_v40 }
 0x937   :  { %3043 = vpow2.f32 %v2209_v44 }
 0x938   :  { %3045 = vtanh.f32 %v1889_v58 }
 0x939   :  { %3047 = vpow2.f32 %v2210_v59 }
 0x940   :  { %v3042_v61 = vpop.eup %3041 }
 0x941   :  { %v1900_v2 = vadd.f32 1.0, %v3042_v61  ;;  %v3044_v5 = vpop.eup %3043 }
 0x942   :  { %v1901_v15 = vadd.f32 1.0, %v3044_v5  ;;  %v3046_v6 = vpop.eup %3045 }
 0x943   :  { %3049 = vrcp.f32 %v1900_v2  ;;  %v3048_v13 = vpop.eup %3047 }
 0x944   :  { %3051 = vrcp.f32 %v1901_v15  ;;  %v1902_v34 = vadd.f32 1.0, %v3048_v13 }
 0x946   :  { %3053 = vrcp.f32 %v1902_v34 }
 0x94d   :  { %v3050_v19 = vpop.eup %3049 }
 0x94e   :  { %v1911_v14 = vmul.f32 %v3050_v19, %v3046_v6  ;;  %v3052_v16 = vpop.eup %3051 }
 0x94f   :  { %v1910_v43 = vmul.f32 %v3052_v16, %v3743_v54  ;;  %v1988_v54 = vrot.slane %v1979_v51, %v72_v9 }
 0x950   :  { %v3054_v56 = vpop.eup %3053 }
 0x951   :  { %v1912_v49 = vadd.f32 %v1911_v14, %v1910_v43 }
 0x953   :  { %3055 = vtanh.f32 %v1912_v49 }
 0x95d   :  { %v3056_v52 = vpop.eup %3055 }
 0x95e   :  { %v1914_v50 = vmul.f32 %v3056_v52, %v3054_v56 }
 0x960   :  { %2066 = vmatmul.mubr.f32.vlgmr.msra.gmra.mrb[20].mxu0 %v1914_v50  ;;  %2137 = vmatmul.mubr.f32.vlgmr.msra.gmra.mrb[20].mxu1 %v1914_v50 }
 0xa33   :  { %v2067_v57 = vpop.f32.mrb[20].mxu0  ;;  %v2138_v0 = vpop.f32.mrb[20].mxu1 }
 0xa34   :  { %v2068_v11 = vadd.f32 %v2067_v57, %v1984_v62  ;;  %v2139_v20 = vadd.f32 %v2138_v0, %v1992_v55  ;;  %v2069_v22 = vpop.f32.mrb[21].mxu0  ;;  %v2140_v27 = vpop.f32.mrb[21].mxu1 }
 0xa35   :  { %v2070_v25 = vadd.f32 %v2069_v22, %v1988_v54  ;;  %v2141_v29 = vadd.f32 %v2140_v27, %v1996_v10 }
 0xa36   :  { %2143 = vst [vmem:[#allocation7] sm:$0xff] %v2068_v11  ;;  %2145 = vst [vmem:[#allocation7 + $0x10] sm:$0xff] %v2139_v20 }
 0xa37   :  { %2144 = vst [vmem:[#allocation7 + $0x8] sm:$0xff] %v2070_v25  ;;  %2146 = vst [vmem:[#allocation7 + $0x18] sm:$0xff] %v2141_v29 }
 0xa38   :  { %3112 = shalt.err (!%p3109_p6)
}
 0xa39   :  { %s3113_s25 = scalar_lea.hbm %s3782_s6, 512 }
 0xa3a   :  { %p3114_p7 = scmp.ne.s32.totalorder %s3782_s6, %s3113_s25  ;;  %p3117_p8 = scmp.lt.u32.totalorder %s3113_s25, %s3782_s6 }
 0xa3c   :  { %p3119_p9 = pnand %p3117_p8, %p3114_p7 }
 0xa3e   :  { %3122 = shalt.err (!%p3119_p9)
}
 0xa3f   :  { %2156 = dma.vmem_to_hbm [thread:$0]  %s2154_s22, 512, %s3782_s6, [#allocation4]  }
 0xa40   :  { %3127 = dma.done.wait [#allocation4], 512  }
 0xa41   :  { %3128 = vsyncadd [#allocation4], 4294966784 }
 0xa42   :  { %2160 = vsyncpa [#allocation3], 1 }
 0xa43   :  { %2161 = vsyncpa [#allocation6], 1 }
 0xa44   :  { %2162 = vsyncpa [#allocation4], 1 }

</bundles_post_ra>
